<compile_context>
chip_gen: v5e
topology: v5e:2x2
jax: 0.10.0
libtpu: 0.0.40
codegen_flags: <defaults>
</compile_context>

<pallas_src>
import functools

import jax
import jax.numpy as jnp
from jax.experimental import pallas as pl
from jax.experimental.pallas import tpu as pltpu


def _round_up(v: int, m: int) -> int:
    return (v + m - 1) // m * m


def _lit_kernel(text_ref, img_ref, wt_ref, bt_ref, wv_ref, bv_ref, scale_ref,
                out_ref, t_emb_ref, v_acc_ref, *, img_samples, out_cols):
    """One (text-tile i, Di-tile k) grid step of the fused LiT forward.

    text_ref : [tT, Dt_p]      bf16  raw text features (tile of texts)
    img_ref  : [S, tT, tK]     bf16  image features, sample-major layout
    wt_ref   : [Dt_p, E_p]     bf16  text projection weight (whole)
    bt_ref   : [1, E_p]        f32   text projection bias
    wv_ref   : [tK, E_p]       bf16  vision projection weight (Di tile)
    bv_ref   : [1, E_p]        f32   vision projection bias
    scale_ref: [1, 1]          f32   logit_scale (pre-exp), SMEM
    out_ref  : [tT, out_cols]  f32   lane-dense output slab (cols >= S, rest 0)
    t_emb_ref: [tT, E_p]       f32   scratch: normalized * exp(scale) text emb
    v_acc_ref: [S, tT, E_p]    f32   scratch: vision projection accumulator
    """
    eps = 1e-12  # matches torch.nn.functional.normalize default
    k = pl.program_id(1)
    nk = pl.num_programs(1)

    @pl.when(k == 0)
    def _init():
        # Text encoder (small; done once per text tile) + L2 normalize.
        # exp(logit_scale) is folded into the [tT, E] text embedding so the
        # logits never need a separate rescale.
        t = jnp.dot(text_ref[...], wt_ref[...],
                    preferred_element_type=jnp.float32) + bt_ref[...]
        ss = jnp.sum(t * t, axis=-1, keepdims=True)
        inv = jax.lax.rsqrt(jnp.maximum(ss, eps * eps))  # == 1 / max(||t||, eps)
        t_emb_ref[...] = t * (inv * jnp.exp(scale_ref[0, 0]))
        v_acc_ref[...] = jnp.zeros_like(v_acc_ref)

    # Vision projection: accumulate this Di (reduction) tile on the MXU.
    # img_samples is a small static int -> unrolled; each dot is a clean 2-D
    # bf16 matmul with f32 accumulation.
    for s in range(img_samples):
        v_acc_ref[s] += jnp.dot(img_ref[s], wv_ref[...],
                                preferred_element_type=jnp.float32)

    @pl.when(k == nk - 1)
    def _finalize():
        t = t_emb_ref[...]                                 # [tT, E_p], pre-scaled
        rows = t.shape[0]
        lane = jax.lax.broadcasted_iota(jnp.int32, (rows, out_cols), 1)
        acc = jnp.zeros((rows, out_cols), jnp.float32)
        for s in range(img_samples):
            # bias added exactly once, after the full Di reduction
            v = v_acc_ref[s] + bv_ref[...]
            ss = jnp.sum(v * v, axis=-1, keepdims=True)
            v = v * jax.lax.rsqrt(jnp.maximum(ss, eps * eps))
            # out[t, s] = <scaled_text[t], normalized_image[t, s]>
            col = jnp.sum(t * v, axis=-1, keepdims=True)   # [tT, 1]
            acc = acc + jnp.where(lane == s, col, 0.0)
        out_ref[...] = acc                                  # single lane-dense store


def lit_forward(text_data, image_data, img_samples, params, *,
                text_tile=16, k_tile=512, out_cols=128,
                compute_dtype=jnp.bfloat16,
                vmem_limit_bytes=32 * 1024 * 1024):
    """LiT forward. Returns [T, img_samples] logits of each text vs. its images."""
    wt, bt, wv, bv, logit_scale = params
    T, Dt = text_data.shape
    I = image_data.shape[0]
    S = int(img_samples)
    if I != T * S:
        raise ValueError(
            f"LiT pairing requires num_images == num_texts * img_samples "
            f"(got {I} != {T} * {S}).")
    E = wt.shape[1]

    # ---- wrapper-side layout plumbing (cheap XLA ops, not kernel work) -----
    img_flat = image_data.reshape(I, -1)                      # NCHW -> [I, Di]
    Di = img_flat.shape[1]
    # Sample-major layout so each kernel tile sees contiguous per-sample rows:
    # img3[s, t, :] == flattened image for (text t, sample s).
    img3 = img_flat.reshape(T, S, Di).transpose(1, 0, 2)      # [S, T, Di]

    lane = 128
    tile_t = _round_up(min(text_tile, _round_up(T, 8)), 8)
    tile_k = _round_up(min(k_tile, Di), lane)
    T_p = _round_up(T, tile_t)
    Dt_p = _round_up(Dt, lane)
    Di_p = _round_up(Di, tile_k)
    E_p = _round_up(E, lane)
    cols = _round_up(max(out_cols, S), lane)

    def pad2(x, r, c, dtype):
        return jnp.pad(x, ((0, r - x.shape[0]), (0, c - x.shape[1]))).astype(dtype)

    text_p = pad2(text_data, T_p, Dt_p, compute_dtype)
    wt_p = pad2(wt, Dt_p, E_p, compute_dtype)
    wv_p = pad2(wv, Di_p, E_p, compute_dtype)
    bt_p = pad2(bt, 1, E_p, jnp.float32)
    bv_p = pad2(bv, 1, E_p, jnp.float32)
    img_p = jnp.pad(img3, ((0, 0), (0, T_p - T), (0, Di_p - Di))).astype(compute_dtype)
    scale = jnp.reshape(logit_scale.astype(jnp.float32), (1, 1))

    grid = (T_p // tile_t, Di_p // tile_k)
    kernel = functools.partial(_lit_kernel, img_samples=S, out_cols=cols)

    out_padded = pl.pallas_call(
        kernel,
        out_shape=jax.ShapeDtypeStruct((T_p, cols), jnp.float32),
        grid=grid,
        in_specs=[
            pl.BlockSpec((tile_t, Dt_p), lambda i, k: (i, 0)),          # text tile
            pl.BlockSpec((S, tile_t, tile_k), lambda i, k: (0, i, k)),  # image tile
            pl.BlockSpec((Dt_p, E_p), lambda i, k: (0, 0)),             # wt (whole)
            pl.BlockSpec((1, E_p), lambda i, k: (0, 0)),                # bt
            pl.BlockSpec((tile_k, E_p), lambda i, k: (k, 0)),           # wv Di-tile
            pl.BlockSpec((1, E_p), lambda i, k: (0, 0)),                # bv
            pl.BlockSpec((1, 1), lambda i, k: (0, 0),
                         memory_space=pltpu.MemorySpace.SMEM),          # logit_scale
        ],
        out_specs=pl.BlockSpec((tile_t, cols), lambda i, k: (i, 0)),
        scratch_shapes=[
            pltpu.VMEM((tile_t, E_p), jnp.float32),        # scaled text embedding
            pltpu.VMEM((S, tile_t, E_p), jnp.float32),     # vision accumulator
        ],
        compiler_params=pltpu.CompilerParams(
            dimension_semantics=("parallel", "arbitrary"),
            vmem_limit_bytes=vmem_limit_bytes,
        ),
    )(text_p, img_p, wt_p, bt_p, wv_p, bv_p, scale)

    return out_padded[:T, :S]


def _reference(text_data, image_data, img_samples, params,
               compute_dtype=jnp.bfloat16):
    """Plain-JAX mirror of the PyTorch forward (inputs quantized like the kernel)."""
    wt, bt, wv, bv, logit_scale = params
    eps = 1e-12
    hi = jax.lax.Precision.HIGHEST
    q = lambda x: x.astype(compute_dtype).astype(jnp.float32)
    t = jnp.dot(q(text_data), q(wt), precision=hi) + bt[0]
    t = t / jnp.maximum(jnp.linalg.norm(t, axis=-1, keepdims=True), eps)
    v = jnp.dot(q(image_data.reshape(image_data.shape[0], -1)), q(wv),
                precision=hi) + bv[0]
    v = v / jnp.maximum(jnp.linalg.norm(v, axis=-1, keepdims=True), eps)
    logits = jnp.dot(t, v.T, precision=hi) * jnp.exp(logit_scale)
    rows = [logits[ti, img_samples * ti: img_samples * ti + img_samples]
            for ti in range(t.shape[0])]
    return jnp.stack(rows, axis=0)


if __name__ == "__main__":
    # Small, self-consistent shapes.
    T = 32           # text batch
    S = 4            # img_samples
    I = T * S        # image batch (LiT pairing: S images per text)
    Dt = 32          # raw text feature dim
    C, H, W = 4, 16, 16
    E = 32           # embedding_dim
    logit_scale_init = 2.6592

    key = jax.random.PRNGKey(0)
    k1, k2, k3, k4, k5, k6 = jax.random.split(key, 6)

    text_data = jax.random.normal(k1, (T, Dt), dtype=jnp.float32)
    image_data = jax.random.normal(k2, (I, C, H, W), dtype=jnp.float32)

    # TODO(synk): the reference module's vision/text encoders are injected
    # Type[nn.Module] dependencies with unspecified architectures; they are
    # modeled here as linear projections to embedding_dim.
    wt = jax.random.normal(k3, (Dt, E), dtype=jnp.float32) * 0.05
    bt = jax.random.normal(k5, (1, E), dtype=jnp.float32) * 0.01
    wv = jax.random.normal(k4, (C * H * W, E), dtype=jnp.float32) * 0.02
    bv = jax.random.normal(k6, (1, E), dtype=jnp.float32) * 0.01
    logit_scale = jnp.array(logit_scale_init, dtype=jnp.float32)
    params = (wt, bt, wv, bv, logit_scale)

    out = lit_forward(text_data, image_data, S, params)
    out = jax.block_until_ready(out)

    ref = _reference(text_data, image_data, S, params)
    assert out.shape == (T, S), out.shape
    assert jnp.allclose(out, ref, atol=5e-3, rtol=5e-3), (
        float(jnp.max(jnp.abs(out - ref))))

    print("KERNEL_OK")
</pallas_src>

<mosaic_0001>
module attributes {stable_mosaic.version = 11 : i64} {
  func.func @_lit_kernel(%arg0: i32, %arg1: i32, %arg2: memref<16x128xbf16, #tpu.memory_space<vmem>>, %arg3: memref<4x16x512xbf16, #tpu.memory_space<vmem>>, %arg4: memref<128x128xbf16, #tpu.memory_space<vmem>>, %arg5: memref<1x128xf32, #tpu.memory_space<vmem>>, %arg6: memref<512x128xbf16, #tpu.memory_space<vmem>>, %arg7: memref<1x128xf32, #tpu.memory_space<vmem>>, %arg8: memref<1x1xf32, #tpu.memory_space<smem>>, %arg9: memref<16x128xf32, #tpu.memory_space<vmem>>, %arg10: memref<16x128xf32, #tpu.memory_space<vmem>>, %arg11: memref<4x16x128xf32, #tpu.memory_space<vmem>>) attributes {dimension_semantics = [#tpu.dimension_semantics<parallel>, #tpu.dimension_semantics<arbitrary>], iteration_bounds = array<i64: 2, 2>, scalar_prefetch = 0 : i64, scratch_operands = 2 : i64, tpu.core_type = #tpu.core_type<tc>, window_params = [{transform_indices = @transform_0, window_bounds = array<i64: 16, 128>}, {transform_indices = @transform_1, window_bounds = array<i64: 4, 16, 512>}, {pipeline_mode = #tpu.pipeline_mode<synchronous>, transform_indices = @transform_2, window_bounds = array<i64: 128, 128>}, {pipeline_mode = #tpu.pipeline_mode<synchronous>, transform_indices = @transform_3, window_bounds = array<i64: 1, 128>}, {transform_indices = @transform_4, window_bounds = array<i64: 512, 128>}, {pipeline_mode = #tpu.pipeline_mode<synchronous>, transform_indices = @transform_5, window_bounds = array<i64: 1, 128>}, {transform_indices = @transform_6, window_bounds = array<i64: 1, 1>}, {transform_indices = @transform_7, window_bounds = array<i64: 16, 128>}]} {
    %c0_i32 = arith.constant 0 : i32
    %0 = arith.cmpi eq, %arg1, %c0_i32 : i32
    %1 = arith.extui %0 : i1 to i32
    %c0_i32_0 = arith.constant 0 : i32
    %2 = arith.cmpi ne, %1, %c0_i32_0 : i32
    scf.if %2 {
      %c0_45 = arith.constant 0 : index
      %c0_46 = arith.constant 0 : index
      %46 = vector.load %arg2[%c0_45, %c0_46] : memref<16x128xbf16, #tpu.memory_space<vmem>>, vector<16x128xbf16>
      %c0_47 = arith.constant 0 : index
      %c0_48 = arith.constant 0 : index
      %47 = vector.load %arg4[%c0_47, %c0_48] : memref<128x128xbf16, #tpu.memory_space<vmem>>, vector<128x128xbf16>
      %cst_49 = arith.constant dense<0.000000e+00> : vector<16x128xf32>
      %48 = tpu.matmul %46, %47, %cst_49 {dimension_numbers = #tpu.dot_dimension_numbers<[1], [0], [0], [1], [0, 0, 1, 1], [], []>} : vector<16x128xbf16>, vector<128x128xbf16>, vector<16x128xf32> -> vector<16x128xf32>
      %c0_50 = arith.constant 0 : index
      %c0_51 = arith.constant 0 : index
      %49 = vector.load %arg5[%c0_50, %c0_51] : memref<1x128xf32, #tpu.memory_space<vmem>>, vector<1x128xf32>
      %50 = vector.broadcast %49 : vector<1x128xf32> to vector<16x128xf32>
      %51 = arith.addf %48, %50 : vector<16x128xf32>
      %52 = arith.mulf %51, %51 : vector<16x128xf32>
      %cst_52 = arith.constant dense<0.000000e+00> : vector<16xf32>
      %53 = vector.multi_reduction <add>, %52, %cst_52 [1] : vector<16x128xf32> to vector<16xf32>
      %54 = vector.shape_cast %53 : vector<16xf32> to vector<16x1xf32>
      %cst_53 = arith.constant 1.000000e-24 : f32
      %55 = vector.broadcast %cst_53 : f32 to vector<16x1xf32>
      %56 = arith.maximumf %54, %55 : vector<16x1xf32>
      %57 = math.rsqrt %56 : vector<16x1xf32>
      %c0_54 = arith.constant 0 : index
      %c0_55 = arith.constant 0 : index
      %58 = memref.load %arg8[%c0_54, %c0_55] : memref<1x1xf32, #tpu.memory_space<smem>>
      %59 = math.exp %58 : f32
      %60 = vector.broadcast %59 : f32 to vector<16x1xf32>
      %61 = arith.mulf %57, %60 : vector<16x1xf32>
      %62 = vector.broadcast %61 : vector<16x1xf32> to vector<16x128xf32>
      %63 = arith.mulf %51, %62 : vector<16x128xf32>
      %c0_56 = arith.constant 0 : index
      %c0_57 = arith.constant 0 : index
      %64 = vector.load %arg10[%c0_56, %c0_57] : memref<16x128xf32, #tpu.memory_space<vmem>>, vector<16x128xf32>
      tpu.vector_store %arg10[%c0_56, %c0_57], %63 {strides = array<i32>} : memref<16x128xf32, #tpu.memory_space<vmem>>, vector<16x128xf32>,
      %cst_58 = arith.constant 0.000000e+00 : f32
      %65 = vector.broadcast %cst_58 : f32 to vector<4x16x128xf32>
      %c0_59 = arith.constant 0 : index
      %c0_60 = arith.constant 0 : index
      %c0_61 = arith.constant 0 : index
      %66 = vector.load %arg11[%c0_59, %c0_60, %c0_61] : memref<4x16x128xf32, #tpu.memory_space<vmem>>, vector<4x16x128xf32>
      tpu.vector_store %arg11[%c0_59, %c0_60, %c0_61], %65 {strides = array<i32>} : memref<4x16x128xf32, #tpu.memory_space<vmem>>, vector<4x16x128xf32>,
    } else {
    }
    %c0 = arith.constant 0 : index
    %c0_1 = arith.constant 0 : index
    %c0_2 = arith.constant 0 : index
    %3 = vector.load %arg11[%c0, %c0_1, %c0_2] : memref<4x16x128xf32, #tpu.memory_space<vmem>>, vector<1x16x128xf32>
    %4 = vector.shape_cast %3 : vector<1x16x128xf32> to vector<16x128xf32>
    %c0_3 = arith.constant 0 : index
    %c0_4 = arith.constant 0 : index
    %c0_5 = arith.constant 0 : index
    %5 = vector.load %arg3[%c0_3, %c0_4, %c0_5] : memref<4x16x512xbf16, #tpu.memory_space<vmem>>, vector<1x16x512xbf16>
    %6 = vector.shape_cast %5 : vector<1x16x512xbf16> to vector<16x512xbf16>
    %c0_6 = arith.constant 0 : index
    %c0_7 = arith.constant 0 : index
    %7 = vector.load %arg6[%c0_6, %c0_7] : memref<512x128xbf16, #tpu.memory_space<vmem>>, vector<512x128xbf16>
    %cst = arith.constant dense<0.000000e+00> : vector<16x128xf32>
    %8 = tpu.matmul %6, %7, %cst {dimension_numbers = #tpu.dot_dimension_numbers<[1], [0], [0], [1], [0, 0, 1, 1], [], []>} : vector<16x512xbf16>, vector<512x128xbf16>, vector<16x128xf32> -> vector<16x128xf32>
    %9 = arith.addf %4, %8 : vector<16x128xf32>
    %c0_8 = arith.constant 0 : index
    %c0_9 = arith.constant 0 : index
    %c0_10 = arith.constant 0 : index
    %10 = vector.load %arg11[%c0_8, %c0_9, %c0_10] : memref<4x16x128xf32, #tpu.memory_space<vmem>>, vector<1x16x128xf32>
    %11 = vector.shape_cast %10 : vector<1x16x128xf32> to vector<16x128xf32>
    %12 = vector.shape_cast %9 : vector<16x128xf32> to vector<1x16x128xf32>
    tpu.vector_store %arg11[%c0_8, %c0_9, %c0_10], %12 {strides = array<i32>} : memref<4x16x128xf32, #tpu.memory_space<vmem>>, vector<1x16x128xf32>,
    %c1 = arith.constant 1 : index
    %c0_11 = arith.constant 0 : index
    %c0_12 = arith.constant 0 : index
    %13 = vector.load %arg11[%c1, %c0_11, %c0_12] : memref<4x16x128xf32, #tpu.memory_space<vmem>>, vector<1x16x128xf32>
    %14 = vector.shape_cast %13 : vector<1x16x128xf32> to vector<16x128xf32>
    %c1_13 = arith.constant 1 : index
    %c0_14 = arith.constant 0 : index
    %c0_15 = arith.constant 0 : index
    %15 = vector.load %arg3[%c1_13, %c0_14, %c0_15] : memref<4x16x512xbf16, #tpu.memory_space<vmem>>, vector<1x16x512xbf16>
    %16 = vector.shape_cast %15 : vector<1x16x512xbf16> to vector<16x512xbf16>
    %c0_16 = arith.constant 0 : index
    %c0_17 = arith.constant 0 : index
    %17 = vector.load %arg6[%c0_16, %c0_17] : memref<512x128xbf16, #tpu.memory_space<vmem>>, vector<512x128xbf16>
    %cst_18 = arith.constant dense<0.000000e+00> : vector<16x128xf32>
    %18 = tpu.matmul %16, %17, %cst_18 {dimension_numbers = #tpu.dot_dimension_numbers<[1], [0], [0], [1], [0, 0, 1, 1], [], []>} : vector<16x512xbf16>, vector<512x128xbf16>, vector<16x128xf32> -> vector<16x128xf32>
    %19 = arith.addf %14, %18 : vector<16x128xf32>
    %c1_19 = arith.constant 1 : index
    %c0_20 = arith.constant 0 : index
    %c0_21 = arith.constant 0 : index
    %20 = vector.load %arg11[%c1_19, %c0_20, %c0_21] : memref<4x16x128xf32, #tpu.memory_space<vmem>>, vector<1x16x128xf32>
    %21 = vector.shape_cast %20 : vector<1x16x128xf32> to vector<16x128xf32>
    %22 = vector.shape_cast %19 : vector<16x128xf32> to vector<1x16x128xf32>
    tpu.vector_store %arg11[%c1_19, %c0_20, %c0_21], %22 {strides = array<i32>} : memref<4x16x128xf32, #tpu.memory_space<vmem>>, vector<1x16x128xf32>,
    %c2 = arith.constant 2 : index
    %c0_22 = arith.constant 0 : index
    %c0_23 = arith.constant 0 : index
    %23 = vector.load %arg11[%c2, %c0_22, %c0_23] : memref<4x16x128xf32, #tpu.memory_space<vmem>>, vector<1x16x128xf32>
    %24 = vector.shape_cast %23 : vector<1x16x128xf32> to vector<16x128xf32>
    %c2_24 = arith.constant 2 : index
    %c0_25 = arith.constant 0 : index
    %c0_26 = arith.constant 0 : index
    %25 = vector.load %arg3[%c2_24, %c0_25, %c0_26] : memref<4x16x512xbf16, #tpu.memory_space<vmem>>, vector<1x16x512xbf16>
    %26 = vector.shape_cast %25 : vector<1x16x512xbf16> to vector<16x512xbf16>
    %c0_27 = arith.constant 0 : index
    %c0_28 = arith.constant 0 : index
    %27 = vector.load %arg6[%c0_27, %c0_28] : memref<512x128xbf16, #tpu.memory_space<vmem>>, vector<512x128xbf16>
    %cst_29 = arith.constant dense<0.000000e+00> : vector<16x128xf32>
    %28 = tpu.matmul %26, %27, %cst_29 {dimension_numbers = #tpu.dot_dimension_numbers<[1], [0], [0], [1], [0, 0, 1, 1], [], []>} : vector<16x512xbf16>, vector<512x128xbf16>, vector<16x128xf32> -> vector<16x128xf32>
    %29 = arith.addf %24, %28 : vector<16x128xf32>
    %c2_30 = arith.constant 2 : index
    %c0_31 = arith.constant 0 : index
    %c0_32 = arith.constant 0 : index
    %30 = vector.load %arg11[%c2_30, %c0_31, %c0_32] : memref<4x16x128xf32, #tpu.memory_space<vmem>>, vector<1x16x128xf32>
    %31 = vector.shape_cast %30 : vector<1x16x128xf32> to vector<16x128xf32>
    %32 = vector.shape_cast %29 : vector<16x128xf32> to vector<1x16x128xf32>
    tpu.vector_store %arg11[%c2_30, %c0_31, %c0_32], %32 {strides = array<i32>} : memref<4x16x128xf32, #tpu.memory_space<vmem>>, vector<1x16x128xf32>,
    %c3 = arith.constant 3 : index
    %c0_33 = arith.constant 0 : index
    %c0_34 = arith.constant 0 : index
    %33 = vector.load %arg11[%c3, %c0_33, %c0_34] : memref<4x16x128xf32, #tpu.memory_space<vmem>>, vector<1x16x128xf32>
    %34 = vector.shape_cast %33 : vector<1x16x128xf32> to vector<16x128xf32>
    %c3_35 = arith.constant 3 : index
    %c0_36 = arith.constant 0 : index
    %c0_37 = arith.constant 0 : index
    %35 = vector.load %arg3[%c3_35, %c0_36, %c0_37] : memref<4x16x512xbf16, #tpu.memory_space<vmem>>, vector<1x16x512xbf16>
    %36 = vector.shape_cast %35 : vector<1x16x512xbf16> to vector<16x512xbf16>
    %c0_38 = arith.constant 0 : index
    %c0_39 = arith.constant 0 : index
    %37 = vector.load %arg6[%c0_38, %c0_39] : memref<512x128xbf16, #tpu.memory_space<vmem>>, vector<512x128xbf16>
    %cst_40 = arith.constant dense<0.000000e+00> : vector<16x128xf32>
    %38 = tpu.matmul %36, %37, %cst_40 {dimension_numbers = #tpu.dot_dimension_numbers<[1], [0], [0], [1], [0, 0, 1, 1], [], []>} : vector<16x512xbf16>, vector<512x128xbf16>, vector<16x128xf32> -> vector<16x128xf32>
    %39 = arith.addf %34, %38 : vector<16x128xf32>
    %c3_41 = arith.constant 3 : index
    %c0_42 = arith.constant 0 : index
    %c0_43 = arith.constant 0 : index
    %40 = vector.load %arg11[%c3_41, %c0_42, %c0_43] : memref<4x16x128xf32, #tpu.memory_space<vmem>>, vector<1x16x128xf32>
    %41 = vector.shape_cast %40 : vector<1x16x128xf32> to vector<16x128xf32>
    %42 = vector.shape_cast %39 : vector<16x128xf32> to vector<1x16x128xf32>
    tpu.vector_store %arg11[%c3_41, %c0_42, %c0_43], %42 {strides = array<i32>} : memref<4x16x128xf32, #tpu.memory_space<vmem>>, vector<1x16x128xf32>,
    %c1_i32 = arith.constant 1 : i32
    %43 = arith.cmpi eq, %arg1, %c1_i32 : i32
    %44 = arith.extui %43 : i1 to i32
    %c0_i32_44 = arith.constant 0 : i32
    %45 = arith.cmpi ne, %44, %c0_i32_44 : i32
    scf.if %45 {
      %c0_45 = arith.constant 0 : index
      %c0_46 = arith.constant 0 : index
      %46 = vector.load %arg10[%c0_45, %c0_46] : memref<16x128xf32, #tpu.memory_space<vmem>>, vector<16x128xf32>
      %47 = tpu.iota {dimensions = array<i32: 1>} : vector<16x128xi32>
      %cst_47 = arith.constant 0.000000e+00 : f32
      %48 = vector.broadcast %cst_47 : f32 to vector<16x128xf32>
      %c0_48 = arith.constant 0 : index
      %c0_49 = arith.constant 0 : index
      %c0_50 = arith.constant 0 : index
      %49 = vector.load %arg11[%c0_48, %c0_49, %c0_50] : memref<4x16x128xf32, #tpu.memory_space<vmem>>, vector<1x16x128xf32>
      %50 = vector.shape_cast %49 : vector<1x16x128xf32> to vector<16x128xf32>
      %c0_51 = arith.constant 0 : index
      %c0_52 = arith.constant 0 : index
      %51 = vector.load %arg7[%c0_51, %c0_52] : memref<1x128xf32, #tpu.memory_space<vmem>>, vector<1x128xf32>
      %52 = vector.broadcast %51 : vector<1x128xf32> to vector<16x128xf32>
      %53 = arith.addf %50, %52 : vector<16x128xf32>
      %54 = arith.mulf %53, %53 : vector<16x128xf32>
      %cst_53 = arith.constant dense<0.000000e+00> : vector<16xf32>
      %55 = vector.multi_reduction <add>, %54, %cst_53 [1] : vector<16x128xf32> to vector<16xf32>
      %56 = vector.shape_cast %55 : vector<16xf32> to vector<16x1xf32>
      %cst_54 = arith.constant 1.000000e-24 : f32
      %57 = vector.broadcast %cst_54 : f32 to vector<16x1xf32>
      %58 = arith.maximumf %56, %57 : vector<16x1xf32>
      %59 = math.rsqrt %58 : vector<16x1xf32>
      %60 = vector.broadcast %59 : vector<16x1xf32> to vector<16x128xf32>
      %61 = arith.mulf %53, %60 : vector<16x128xf32>
      %62 = arith.mulf %46, %61 : vector<16x128xf32>
      %cst_55 = arith.constant dense<0.000000e+00> : vector<16xf32>
      %63 = vector.multi_reduction <add>, %62, %cst_55 [1] : vector<16x128xf32> to vector<16xf32>
      %64 = vector.shape_cast %63 : vector<16xf32> to vector<16x1xf32>
      %c0_i32_56 = arith.constant 0 : i32
      %65 = vector.broadcast %c0_i32_56 : i32 to vector<16x128xi32>
      %66 = arith.cmpi eq, %47, %65 : vector<16x128xi32>
      %cst_57 = arith.constant 0.000000e+00 : f32
      %67 = vector.shape_cast %64 : vector<16x1xf32> to vector<16x1xf32>
      %68 = vector.broadcast %67 : vector<16x1xf32> to vector<16x128xf32>
      %69 = vector.broadcast %cst_57 : f32 to vector<16x128xf32>
      %70 = arith.select %66, %68, %69 : vector<16x128xi1>, vector<16x128xf32>
      %71 = arith.addf %48, %70 : vector<16x128xf32>
      %c1_58 = arith.constant 1 : index
      %c0_59 = arith.constant 0 : index
      %c0_60 = arith.constant 0 : index
      %72 = vector.load %arg11[%c1_58, %c0_59, %c0_60] : memref<4x16x128xf32, #tpu.memory_space<vmem>>, vector<1x16x128xf32>
      %73 = vector.shape_cast %72 : vector<1x16x128xf32> to vector<16x128xf32>
      %c0_61 = arith.constant 0 : index
      %c0_62 = arith.constant 0 : index
      %74 = vector.load %arg7[%c0_61, %c0_62] : memref<1x128xf32, #tpu.memory_space<vmem>>, vector<1x128xf32>
      %75 = vector.broadcast %74 : vector<1x128xf32> to vector<16x128xf32>
      %76 = arith.addf %73, %75 : vector<16x128xf32>
      %77 = arith.mulf %76, %76 : vector<16x128xf32>
      %cst_63 = arith.constant dense<0.000000e+00> : vector<16xf32>
      %78 = vector.multi_reduction <add>, %77, %cst_63 [1] : vector<16x128xf32> to vector<16xf32>
      %79 = vector.shape_cast %78 : vector<16xf32> to vector<16x1xf32>
      %cst_64 = arith.constant 1.000000e-24 : f32
      %80 = vector.broadcast %cst_64 : f32 to vector<16x1xf32>
      %81 = arith.maximumf %79, %80 : vector<16x1xf32>
      %82 = math.rsqrt %81 : vector<16x1xf32>
      %83 = vector.broadcast %82 : vector<16x1xf32> to vector<16x128xf32>
      %84 = arith.mulf %76, %83 : vector<16x128xf32>
      %85 = arith.mulf %46, %84 : vector<16x128xf32>
      %cst_65 = arith.constant dense<0.000000e+00> : vector<16xf32>
      %86 = vector.multi_reduction <add>, %85, %cst_65 [1] : vector<16x128xf32> to vector<16xf32>
      %87 = vector.shape_cast %86 : vector<16xf32> to vector<16x1xf32>
      %c1_i32_66 = arith.constant 1 : i32
      %88 = vector.broadcast %c1_i32_66 : i32 to vector<16x128xi32>
      %89 = arith.cmpi eq, %47, %88 : vector<16x128xi32>
      %cst_67 = arith.constant 0.000000e+00 : f32
      %90 = vector.shape_cast %87 : vector<16x1xf32> to vector<16x1xf32>
      %91 = vector.broadcast %90 : vector<16x1xf32> to vector<16x128xf32>
      %92 = vector.broadcast %cst_67 : f32 to vector<16x128xf32>
      %93 = arith.select %89, %91, %92 : vector<16x128xi1>, vector<16x128xf32>
      %94 = arith.addf %71, %93 : vector<16x128xf32>
      %c2_68 = arith.constant 2 : index
      %c0_69 = arith.constant 0 : index
      %c0_70 = arith.constant 0 : index
      %95 = vector.load %arg11[%c2_68, %c0_69, %c0_70] : memref<4x16x128xf32, #tpu.memory_space<vmem>>, vector<1x16x128xf32>
      %96 = vector.shape_cast %95 : vector<1x16x128xf32> to vector<16x128xf32>
      %c0_71 = arith.constant 0 : index
      %c0_72 = arith.constant 0 : index
      %97 = vector.load %arg7[%c0_71, %c0_72] : memref<1x128xf32, #tpu.memory_space<vmem>>, vector<1x128xf32>
      %98 = vector.broadcast %97 : vector<1x128xf32> to vector<16x128xf32>
      %99 = arith.addf %96, %98 : vector<16x128xf32>
      %100 = arith.mulf %99, %99 : vector<16x128xf32>
      %cst_73 = arith.constant dense<0.000000e+00> : vector<16xf32>
      %101 = vector.multi_reduction <add>, %100, %cst_73 [1] : vector<16x128xf32> to vector<16xf32>
      %102 = vector.shape_cast %101 : vector<16xf32> to vector<16x1xf32>
      %cst_74 = arith.constant 1.000000e-24 : f32
      %103 = vector.broadcast %cst_74 : f32 to vector<16x1xf32>
      %104 = arith.maximumf %102, %103 : vector<16x1xf32>
      %105 = math.rsqrt %104 : vector<16x1xf32>
      %106 = vector.broadcast %105 : vector<16x1xf32> to vector<16x128xf32>
      %107 = arith.mulf %99, %106 : vector<16x128xf32>
      %108 = arith.mulf %46, %107 : vector<16x128xf32>
      %cst_75 = arith.constant dense<0.000000e+00> : vector<16xf32>
      %109 = vector.multi_reduction <add>, %108, %cst_75 [1] : vector<16x128xf32> to vector<16xf32>
      %110 = vector.shape_cast %109 : vector<16xf32> to vector<16x1xf32>
      %c2_i32 = arith.constant 2 : i32
      %111 = vector.broadcast %c2_i32 : i32 to vector<16x128xi32>
      %112 = arith.cmpi eq, %47, %111 : vector<16x128xi32>
      %cst_76 = arith.constant 0.000000e+00 : f32
      %113 = vector.shape_cast %110 : vector<16x1xf32> to vector<16x1xf32>
      %114 = vector.broadcast %113 : vector<16x1xf32> to vector<16x128xf32>
      %115 = vector.broadcast %cst_76 : f32 to vector<16x128xf32>
      %116 = arith.select %112, %114, %115 : vector<16x128xi1>, vector<16x128xf32>
      %117 = arith.addf %94, %116 : vector<16x128xf32>
      %c3_77 = arith.constant 3 : index
      %c0_78 = arith.constant 0 : index
      %c0_79 = arith.constant 0 : index
      %118 = vector.load %arg11[%c3_77, %c0_78, %c0_79] : memref<4x16x128xf32, #tpu.memory_space<vmem>>, vector<1x16x128xf32>
      %119 = vector.shape_cast %118 : vector<1x16x128xf32> to vector<16x128xf32>
      %c0_80 = arith.constant 0 : index
      %c0_81 = arith.constant 0 : index
      %120 = vector.load %arg7[%c0_80, %c0_81] : memref<1x128xf32, #tpu.memory_space<vmem>>, vector<1x128xf32>
      %121 = vector.broadcast %120 : vector<1x128xf32> to vector<16x128xf32>
      %122 = arith.addf %119, %121 : vector<16x128xf32>
      %123 = arith.mulf %122, %122 : vector<16x128xf32>
      %cst_82 = arith.constant dense<0.000000e+00> : vector<16xf32>
      %124 = vector.multi_reduction <add>, %123, %cst_82 [1] : vector<16x128xf32> to vector<16xf32>
      %125 = vector.shape_cast %124 : vector<16xf32> to vector<16x1xf32>
      %cst_83 = arith.constant 1.000000e-24 : f32
      %126 = vector.broadcast %cst_83 : f32 to vector<16x1xf32>
      %127 = arith.maximumf %125, %126 : vector<16x1xf32>
      %128 = math.rsqrt %127 : vector<16x1xf32>
      %129 = vector.broadcast %128 : vector<16x1xf32> to vector<16x128xf32>
      %130 = arith.mulf %122, %129 : vector<16x128xf32>
      %131 = arith.mulf %46, %130 : vector<16x128xf32>
      %cst_84 = arith.constant dense<0.000000e+00> : vector<16xf32>
      %132 = vector.multi_reduction <add>, %131, %cst_84 [1] : vector<16x128xf32> to vector<16xf32>
      %133 = vector.shape_cast %132 : vector<16xf32> to vector<16x1xf32>
      %c3_i32 = arith.constant 3 : i32
      %134 = vector.broadcast %c3_i32 : i32 to vector<16x128xi32>
      %135 = arith.cmpi eq, %47, %134 : vector<16x128xi32>
      %cst_85 = arith.constant 0.000000e+00 : f32
      %136 = vector.shape_cast %133 : vector<16x1xf32> to vector<16x1xf32>
      %137 = vector.broadcast %136 : vector<16x1xf32> to vector<16x128xf32>
      %138 = vector.broadcast %cst_85 : f32 to vector<16x128xf32>
      %139 = arith.select %135, %137, %138 : vector<16x128xi1>, vector<16x128xf32>
      %140 = arith.addf %117, %139 : vector<16x128xf32>
      %c0_86 = arith.constant 0 : index
      %c0_87 = arith.constant 0 : index
      %141 = vector.load %arg9[%c0_86, %c0_87] : memref<16x128xf32, #tpu.memory_space<vmem>>, vector<16x128xf32>
      tpu.vector_store %arg9[%c0_86, %c0_87], %140 {strides = array<i32>} : memref<16x128xf32, #tpu.memory_space<vmem>>, vector<16x128xf32>,
    } else {
    }
    return
  }
  func.func @transform_0(%arg0: i32, %arg1: i32) -> (i32, i32) {
    %c0_i32 = arith.constant 0 : i32
    %c0_i32_0 = arith.constant 0 : i32
    return %arg0, %c0_i32 : i32, i32
  }
  func.func @transform_1(%arg0: i32, %arg1: i32) -> (i32, i32, i32) {
    %c0_i32 = arith.constant 0 : i32
    %c0_i32_0 = arith.constant 0 : i32
    return %c0_i32, %arg0, %arg1 : i32, i32, i32
  }
  func.func @transform_2(%arg0: i32, %arg1: i32) -> (i32, i32) {
    %c0_i32 = arith.constant 0 : i32
    %c0_i32_0 = arith.constant 0 : i32
    %c0_i32_1 = arith.constant 0 : i32
    return %c0_i32, %c0_i32_0 : i32, i32
  }
  func.func @transform_3(%arg0: i32, %arg1: i32) -> (i32, i32) {
    %c0_i32 = arith.constant 0 : i32
    %c0_i32_0 = arith.constant 0 : i32
    %c0_i32_1 = arith.constant 0 : i32
    return %c0_i32, %c0_i32_0 : i32, i32
  }
  func.func @transform_4(%arg0: i32, %arg1: i32) -> (i32, i32) {
    %c0_i32 = arith.constant 0 : i32
    %c0_i32_0 = arith.constant 0 : i32
    return %arg1, %c0_i32 : i32, i32
  }
  func.func @transform_5(%arg0: i32, %arg1: i32) -> (i32, i32) {
    %c0_i32 = arith.constant 0 : i32
    %c0_i32_0 = arith.constant 0 : i32
    %c0_i32_1 = arith.constant 0 : i32
    return %c0_i32, %c0_i32_0 : i32, i32
  }
  func.func @transform_6(%arg0: i32, %arg1: i32) -> (i32, i32) {
    %c0_i32 = arith.constant 0 : i32
    %c0_i32_0 = arith.constant 0 : i32
    %c0_i32_1 = arith.constant 0 : i32
    return %c0_i32, %c0_i32_0 : i32, i32
  }
  func.func @transform_7(%arg0: i32, %arg1: i32) -> (i32, i32) {
    %c0_i32 = arith.constant 0 : i32
    %c0_i32_0 = arith.constant 0 : i32
    return %arg0, %c0_i32 : i32, i32
  }
}

</mosaic_0001>

<bundles_post_ra>
// kernel: tpu_custom_call.1
= control target key start
LH: loop header
LB: loop body
LE: loop exit
PB: predicated region body
PF: predicated region fallthrough
CT: control target
= control target key end

     0   :  { %s4237_s0 = inlined_call_operand.hbm [shape: bf16[32,128], index: 0, kind: input, shape index: {}]   ;;  %s4238_s1 = inlined_call_operand.hbm [shape: bf16[4,32,1024], index: 1, kind: input, shape index: {}]   ;;  %s4239_s2 = inlined_call_operand.hbm [shape: bf16[128,128], index: 2, kind: input, shape index: {}]   ;;  %s4240_s3 = inlined_call_operand.vmem [shape: f32[1,128], index: 3, kind: input, shape index: {}]   ;;  %s4241_s4 = inlined_call_operand.hbm [shape: bf16[1024,128], index: 4, kind: input, shape index: {}]   ;;  %s4242_s5 = inlined_call_operand.vmem [shape: f32[1,128], index: 5, kind: input, shape index: {}]   ;;  %s4243_s6 = inlined_call_operand.<no memory space> [shape: f32[1,1], index: 6, kind: input, shape index: {}]   ;;  %s4244_s7 = inlined_call_operand.hbm [shape: f32[32,128], index: 7, kind: output, shape index: {}]  }
   0x1   :  { %4264 = sst [smem:[#allocation36_spill]] %s4237_s0 }
   0x2   :  { %4265 = sst [smem:[#allocation37_spill]] %s4238_s1 }
   0x3   :  { %4266 = sst [smem:[#allocation38_spill]] %s4239_s2 }
   0x4   :  { %4267 = sst [smem:[#allocation39_spill]] %s4240_s3 }
   0x5   :  { %4268 = sst [smem:[#allocation40_spill]] %s4242_s5 }
   0x6   :  { %4269 = sst [smem:[#allocation41_spill]] %s4244_s7 }
   0x7   :  { %12 = sst [smem:[#allocation4]] %s4243_s6 }
   0x8   :  { %13 = vsyncpa [#allocation6], 0 }
   0x9   :  { %15 = vsyncpa [#allocation6 + $0x1], 0 }
   0xa   :  { %16 = vsyncpa [#allocation9], 0 }
   0xb   :  { %18 = vsyncpa [#allocation9 + $0x1], 0 }
   0xc   :  { %19 = vsyncpa [#allocation12], 0 }
   0xd   :  { %21 = vsyncpa [#allocation12 + $0x1], 0 }
   0xe   :  { %22 = vsyncpa [#allocation7], 0 }
   0xf   :  { %24 = vsyncpa [#allocation7 + $0x1], 0  ;;  %s3612_s26 = smov 0   ;;  %s3614_s27 = smov 0  }
  0x10   :  { %s3616_s28 = smov 0   ;;  %s3618_s29 = smov 0  }
  0x11   :  { %s3620_s30 = smov 0   ;;  %s3622_s8 = smov 0  }
  0x12   :  { %s3624_s6 = smov 0   ;;  %s3626_s9 = smov 0  }
  0x13   :  { %s3628_s10 = smov 0   ;;  %s3630_s11 = smov 0  }
  0x14   :  { %s3632_s12 = smov 0   ;;  %s3634_s13 = smov 0  }
  0x15   :  { %s3636_s14 = smov 0   ;;  %s3638_s15 = smov 0  }
  0x16 LB: > { %4270 = sst [smem:[#allocation22_spill]] %s3505_s27  ;;  %s3683_s16 = sadd.s32 4294967295, %s3553_s15   ;;  %s3553_s15 = sphi %s3638_s15, %s30_s15   ;;  %s3549_s14 = sphi %s3636_s14, %s4331_s14   ;;  %s3545_s13 = sphi %s3634_s13, %s4341_s13   ;;  %s3541_s12 = sphi %s3632_s12, %s4329_s12   ;;  %s3537_s11 = sphi %s3630_s11, %s4340_s11   ;;  %s3533_s10 = sphi %s3628_s10, %s4339_s10   ;;  %s3529_s9 = sphi %s3626_s9, %s4338_s9   ;;  %s3525_s6 = sphi %s3624_s6, %s4337_s6   ;;  %s3521_s8 = sphi %s3622_s8, %s4336_s8   ;;  %s3517_s30 = sphi %s3620_s30, %s4335_s30   ;;  %s3513_s29 = sphi %s3618_s29, %s4334_s29   ;;  %s3509_s28 = sphi %s3616_s28, %s4333_s28   ;;  %s3505_s27 = sphi %s3614_s27, %s4332_s27   ;;  %s3501_s26 = sphi %s3612_s26, %s4325_s26  }
  0x17   : > { %4271 = sst [smem:[#allocation23_spill]] %s3525_s6  ;;  %s39_s18 = sadd.s32 1, %s3545_s13 }
  0x18   : > { %4272 = sst [smem:[#allocation24_spill]] %s3537_s11  ;;  %s42_s19 = sadd.s32 1, %s3549_s14 }
  0x19   : > { %4273 = sst [smem:[#allocation25_spill]] %s3541_s12  ;;  %p40_p0 = scmp.ge.s32.totalorder %s39_s18, 2 }
  0x1a   : > { %4274 = sst [smem:[#allocation26_spill]] %s3549_s14  ;;  %s49_s20 = sadd.s32 1, %s3533_s10 }
  0x1b   : > { %p4249_p1 = scmp.ne.s32.totalorder %s3533_s10, %s3529_s9  ;;  %p57_p2 = scmp.eq.s32.totalorder %s3553_s15, 0 }
  0x1c   : > { %s4343_s18 = smov (%p40_p0, %s39_s18), 0  ;;  %s4345_s19 = smov (!%p40_p0, %s42_s19), %s3549_s14 }
  0x1d   : > { %4275 = sst [smem:[#allocation27_spill]] %s4343_s18  ;;  %p3700_p3 = por %p57_p2, %p4249_p1 }
  0x1e   : > { %p4248_p4 = scmp.ne.s32.totalorder %s3529_s9, %s3525_s6  ;;  %p44_p5 = scmp.ge.s32.totalorder %s4345_s19, 2 }
  0x1f   : > { %p63_p6 = scmp.eq.s32.totalorder %s3683_s16, 0  ;;  %s73_s22 = ssub.s32 %s3545_s13, %s4343_s18 }
  0x20   : > { %s77_s23 = sadd.s32 1, %s3521_s8  ;;  %s4347_s19 = smov (%p44_p5, %s4345_s19), 0 }
  0x21   : > { %4277 = sst [smem:[#allocation28_spill]] %s4347_s19  ;;  %p3717_p7 = por %p63_p6, %p4248_p4 }
  0x22   : > { %p84_p8 = scmp.ne.s32.totalorder %s3521_s8, %s3517_s30  ;;  %s46_s25 = ssub.s32 %s3549_s14, %s4347_s19 }
  0x23   : > { %s4278_s24 = scalar_select %p3717_p7, 1, 0 }
  0x24   : > { %p90_p9 = scmp.ne.s32.totalorder %s3517_s30, %s3513_s29  ;;  %p47_p10 = scmp.eq.s32.totalorder %s46_s25, 0 }
  0x25   : > { %s74_s17 = sor.u32 %s73_s22, %s46_s25  ;;  %p3729_p12 = por %p84_p8, %p57_p2 }
  0x26   : > { %p75_p11 = scmp.eq.s32.totalorder %s74_s17, 0  ;;  %p3741_p13 = por %p90_p9, %p63_p6 }
  0x27   : > { %s3734_s7 = scalar_select %p47_p10, %s3533_s10, %s49_s20  }
  0x28   : > { %s3737_s19 = scalar_select %p75_p11, %s3521_s8, %s77_s23  }
  0x29   : > { %4280 = sst [smem:[#allocation29_spill]] %s3734_s7  ;;  %p143_p0 = scmp.eq.s32.totalorder %s73_s22, 0 }
  0x2a   : > { %4281 = sst [smem:[#allocation30_spill]] %s3737_s19  ;;  %s145_s25 = sadd.s32 1, %s3509_s28 }
  0x2b   : > { %s4282_s29 = scalar_select %p3741_p13, 1, 0 }
  0x2c   : > { %p152_p5 = scmp.ne.s32.totalorder %s3509_s28, %s3505_s27  ;;  %p158_p10 = scmp.ne.s32.totalorder %s3505_s27, %s3501_s26 }
  0x2d   : > { %4283 = sst [smem:[#allocation31_spill]] %s4282_s29  ;;  %p224_p4 = scmp.eq.s32.totalorder %s3683_s16, 3 }
  0x2e   : > { %s3749_s17 = scalar_select %p143_p0, %s3509_s28, %s145_s25  }
  0x2f   : > { %p3753_p8 = por %p152_p5, %p57_p2  ;;  %s4286_s20 = sadd.s32 4294967294, %s3553_s15  }
  0x30   : > { %4284 = sst [smem:[#allocation32_spill]] %s3749_s17  ;;  %p230_p11 = scmp.eq.s32.totalorder %s4286_s20, 3 }
  0x31   : > { %p3764_p9 = por %p158_p10, %p63_p6  ;;  %p2317_p1 = scmp.ge.s32.totalorder %s3553_s15, 1 }
  0x32   : > { %p4289_p13 = scmp.ne.s32.totalorder %s3533_s10, %s3529_s9  ;;  %p4292_p2 = scmp.ne.s32.totalorder %s3529_s9, %s3525_s6 }
  0x33   : > { %s4287_s23 = scalar_select %p3764_p9, 1, 0 }
  0x34   : > { %p3772_p7 = por %p224_p4, %p4289_p13  ;;  %p3779_p0 = por %p230_p11, %p4292_p2 }
  0x35   : > { %4288 = sst [smem:[#allocation33_spill]] %s4287_s23  ;;  %p237_p5 = scmp.lt.s32.totalorder %s3553_s15, 5 }
  0x36   : > { %s4290_s22 = scalar_select %p3772_p7, 1, 0 }
  0x37   : > { %s4293_s25 = scalar_select %p3779_p0, 1, 0 }
  0x38   : > { %4291 = sst [smem:[#allocation34_spill]] %s4290_s22  ;;  %p3787_p10 = pnand %p2317_p1, %p237_p5 }
  0x39   : > { %4294 = sst [smem:[#allocation35_spill]] %s4293_s25  ;;  %s3555_s17 = smov [#allocation10]  }
  0x3a   : > { %s4295_s2 = sld [smem:[#allocation38_spill]]  ;;  %s250_s5 = sshll.u32 %s3555_s17, 4  ;;  %s251_s5 = int_to_ptr.vmem [resolvable:$true] %s250_s5 }
  0x3b   : > { %p3148_p4 = pneg %p3787_p10  ;;  %s3556_s6 = smov 64  }
  0x3c   : > { %s3557_s25 = smov 4   ;;  %p2319_p11 = scmp.ge.s32.totalorder %s3553_s15, 4 }
  0x3d   : > { %p3149_p13 = pnand %p3148_p4, %p63_p6  ;;  %s273_s7 = sand.u32 (!%p2319_p11), 1, %s3533_s10  }
  0x3e   : > { %269 = sbr.rel (%p2319_p11) target bundleno = 94 (0x5e), region = 32  ;;  %s2970_s26 = sshll.u32 (!%p2319_p11), %s3549_s14, 3 }
  0x3f   : > { %s4297_s0 = sld [smem:[#allocation36_spill]] (!%p2319_p11)  ;;  %s274_s29 = scalar_lea.sflag (!%p2319_p11), [#allocation6], %s273_s7 }
  0x40   : > { %s248_s20 = sshll.u32 %s4295_s2, 4  ;;  %s2320_s2 = sshll.u32 (!%p2319_p11), %s273_s7, 3  ;;  %s249_s20 = int_to_ptr.hbm [resolvable:$true] %s248_s20 }
  0x41   : > { %3151 = dma.hbm_to_vmem [thread:$0]  (!%p3149_p13), %s249_s20, 1024, %s251_s5, [#allocation9], %s3556_s6, %s3556_s6, %s3557_s25  }
  0x42   : > { %s277_s23 = scalar_lea.vmem (!%p2319_p11), [#allocation5], %s2320_s2  ;;  %s4261_s5 = smov (!%p2319_p11), 64  }
  0x43   : > { %s285_s27 = sshll.u32 %s277_s23, 4  ;;  %s4262_s6 = smov 4   ;;  %s286_s27 = int_to_ptr.vmem [resolvable:$true] %s285_s27 }
  0x45   : > { %s282_s3 = scalar_lea.hbm %s4297_s0, %s2970_s26 }
  0x46   : > { %s283_s11 = sshll.u32 %s282_s3, 4  ;;  %s284_s11 = int_to_ptr.hbm [resolvable:$true] %s283_s11 }
  0x47   : > { %3131 = dma.hbm_to_vmem [thread:$0]  (%p3700_p3), %s284_s11, 128, %s286_s27, %s274_s29, %s4261_s5, %s4261_s5, %s4262_s6  }
  0x48   : > { %s295_s22 = sand.u32 1, %s3553_s15   ;;  %s297_s3 = sand.u32 1, %s3521_s8  }
  0x49   : > { %s2323_s2 = sshll.u32 %s297_s3, 7  ;;  %s2325_s23 = sshll.u32 %s3545_s13, 2 }
  0x4a   : > { %s2971_s25 = sshll.u32 %s3549_s14, 4  ;;  %s299_s21 = scalar_lea.vmem [#allocation8], %s2323_s2 }
  0x4b   : > { %s305_s20 = sadd.s32 %s2971_s25, %s2325_s23  ;;  %s322_s7 = sshll.u32 %s299_s21, 4  ;;  %s323_s7 = int_to_ptr.vmem [resolvable:$true] %s322_s7 }
  0x4c   : > { %s2327_s26 = sshll.u32 %s305_s20, 2  ;;  %s4298_s1 = sld [smem:[#allocation37_spill]] }
  0x4d   : > { %s3560_s17 = smov 2048   ;;  %s3561_s0 = smov 512  }
  0x4e   : > { %3133 = sst [smem:[#allocation15]] (%p3729_p12), %s3560_s17  ;;  %s3562_s2 = smov 2  }
  0x4f   : > { %s3132_s5 = scalar_select %p3729_p12, [#allocation0], [#allocation16] }
  0x50   : > { %3134 = sst [smem:[#allocation15 + $0x1]] (%p3729_p12), %s3561_s0  ;;  %s3563_s23 = smov 256  }
  0x51   : > { %s312_s3 = sld [smem:[%s3132_s5]]   ;;  %s3564_s25 = smov 16  }
  0x52   : > { %s307_s29 = scalar_lea.hbm %s4298_s1, %s2327_s26  ;;  %3135 = sst [smem:[#allocation15 + $0x2]] (%p3729_p12), %s3562_s2 }
  0x53   : > { %s320_s6 = sshll.u32 %s307_s29, 4  ;;  %3136 = sst [smem:[#allocation15 + $0x3]] (%p3729_p12), %s3561_s0  ;;  %s321_s6 = int_to_ptr.hbm [resolvable:$true] %s320_s6 }
  0x54   : > { %3137 = sst [smem:[#allocation15 + $0x4]] (%p3729_p12), %s3563_s23  ;;  %s296_s5 = scalar_lea.sflag [#allocation9], %s295_s22 }
  0x55   : > { %3138 = sst [smem:[#allocation15 + $0x5]] (%p3729_p12), %s3564_s25  ;;  %s3565_s26 = smov [#allocation14]  }
  0x56   : > { %s345_s27 = sand.u32 1, %s3509_s28   ;;  %s2972_s11 = sshll.u32 %s3545_s13, 8 }
  0x57   : > { %s2328_s20 = sshll.u32 %s312_s3, 26  ;;  %s2330_s29 = sshll.u32 %s345_s27, 8 }
  0x58   : > { %s2329_s21 = sadd.s32 134217728, %s2328_s20  ;;  %s354_s2 = scalar_lea.hbm %s4241_s4, %s2972_s11 }
  0x59   : > { %3139 = dma.general (%p3729_p12), %s321_s6, 2048, %s323_s7, %s296_s5, %s3565_s26, [#allocation15], %s2329_s21, 0  }
  0x5a   : > { %s355_s23 = sshll.u32 %s354_s2, 4  ;;  %s349_s1 = scalar_lea.vmem [#allocation11], %s2330_s29  ;;  %s356_s23 = int_to_ptr.hbm [resolvable:$true] %s355_s23 }
  0x5b   : > { %s357_s14 = sshll.u32 %s349_s1, 4  ;;  %s346_s3 = scalar_lea.sflag [#allocation12], %s345_s27  ;;  %s358_s14 = int_to_ptr.vmem [resolvable:$true] %s357_s14 }
  0x5c   : > { %s4299_s22 = smov 4   ;;  %s4300_s18 = smov 64  }
  0x5d   : > { %3140 = dma.hbm_to_vmem [thread:$0]  (%p3753_p8), %s356_s23, 4096, %s358_s14, %s346_s3, %s4300_s18, %s4300_s18, %s4299_s22  }
  0x5e PF: > { %369 = sbr.rel (%p3787_p10) target bundleno = 1035 (0x40b), region = 48  ;;  %s3842_s6 = sand.u32 (!%p3787_p10), 1, %s3529_s9  }
  0x5f   : > { %s2334_s7 = sshll.u32 (!%p3787_p10), %s3842_s6, 3  ;;  %s372_s1 = scalar_lea.sflag (!%p3787_p10), [#allocation6], %s3842_s6 }
  0x60   : > { %s3846_s25 = scalar_lea.vmem (!%p3787_p10), [#allocation5], %s2334_s7  ;;  %p4301_p1 = scmp.ne.s32.totalorder (!%p3787_p10), %s4278_s24, 0 }
  0x63   : > { %3480 = dma.done.wait (%p4301_p1), %s372_s1, 128  }
  0x64   : > { %3482 = vsyncadd (%p4301_p1), %s372_s1, 4294967168  ;;  %s4302_s12 = sld [smem:[#allocation31_spill]]  ;;  %s381_s14 = sand.u32 1, %s3683_s16  }
  0x65   : > { %s383_s19 = sand.u32 1, %s3517_s30   ;;  %s382_s21 = scalar_lea.sflag [#allocation9], %s381_s14 }
  0x66   : > { %s2335_s20 = sshll.u32 %s383_s19, 7 }
  0x67   : > { %s3854_s5 = scalar_lea.vmem [#allocation8], %s2335_s20 }
  0x6a   : > { %p4303_p3 = scmp.ne.s32.totalorder %s4302_s12, 0 }
  0x6c   : > { %3484 = dma.done.wait (%p4303_p3), %s382_s21, 2048  }
  0x6d   : > { %3486 = vsyncadd (%p4303_p3), %s382_s21, 4294965248 }
  0x6e   : > { %3488 = dma.done.wait (%p63_p6), [#allocation9], 1024  }
  0x6f   : > { %3490 = vsyncadd (%p63_p6), [#allocation9], 4294966272  ;;  %s4304_s24 = sld [smem:[#allocation22_spill]] }
  0x75   : > { %s396_s27 = sand.u32 1, %s4304_s24  }
  0x76   : > { %s2337_s11 = sshll.u32 %s396_s27, 8  ;;  %s397_s29 = scalar_lea.sflag [#allocation12], %s396_s27 }
  0x77   : > { %s3865_s0 = scalar_lea.vmem [#allocation11], %s2337_s11 }
  0x78   : > { %3492 = dma.done.wait (%p3764_p9), %s397_s29, 4096  }
  0x79   : > { %3494 = vsyncadd (%p3764_p9), %s397_s29, 4294963200  ;;  %s2338_s17 = sshll.u32 %s3842_s6, 4  ;;  %s4306_s23 = sld [smem:[#allocation24_spill]] }
  0x7a   : > { %s3872_s2 = scalar_lea.vmem [#allocation13], %s2338_s17 }
  0x7f   : > { %p2339_p12 = scmp.ne.s32.totalorder %s4306_s23, 0 }
  0x80   : > { %s569_s16 = sld [smem:[#allocation4]] (!%p2339_p12) }
  0x81   : > { %450 = sbr.rel (%p2339_p12) target bundleno = 445 (0x1bd), region = 68  ;;  %s4307_s18 = sld [smem:[#allocation39_spill]] (!%p2339_p12) }
  0x86   : > { %v2981_v0 = vld [vmem:[#allocation10 + $0x38] sm:$0xff]  ;;  %v2980_v1 = vld [vmem:[#allocation10 + $0x30] sm:$0xff]  ;;  %v2979_v2 = vld [vmem:[#allocation10 + $0x28] sm:$0xff]  ;;  %v570_v9 = vstv %s569_s16  ;;  %v3566_v21 = vmov 0.0  }
  0x87   : > { %527 = vmatpush.bf16.msra.mxu0 %v2981_v0  ;;  %v2978_v3 = vld [vmem:[#allocation10 + $0x20] sm:$0xff]  ;;  %v2977_v4 = vld [vmem:[#allocation10 + $0x18] sm:$0xff]  ;;  %v2976_v5 = vld [vmem:[#allocation10 + $0x10] sm:$0xff]  ;;  %v571_v10 = vmul.f32 1.442695, %v570_v9  ;;  %581 = vst [vmem:[#allocation3 + $0x28] sm:$0xff] %v3566_v21 }
  0x88   : > { %v2975_v6 = vld [vmem:[#allocation10 + $0x8] sm:$0xff]  ;;  %v2974_v7 = vld [vmem:[#allocation10] sm:$0xff]  ;;  %v2973_v8 = vld [vmem:[%s3846_s25] sm:$0xff]  ;;  %582 = vst [vmem:[#allocation3 + $0x10] sm:$0xff] %v3566_v21 }
  0x89   : > { %3286 = vpow2.f32 %v571_v10  ;;  %v3285_v12 = vld [vmem:[%s4307_s18] ss:$0 sm:$0xff]  ;;  %583 = vst [vmem:[#allocation3 + $0x8] sm:$0xff] %v3566_v21 }
  0x8a   : > { %584 = vst [vmem:[#allocation3 + $0x18] sm:$0xff] %v3566_v21 }
  0x8b   : > { %528 = vmatpush.bf16.msra.mxu0 %v2980_v1  ;;  %585 = vst [vmem:[#allocation3 + $0x20] sm:$0xff] %v3566_v21 }
  0x8c   : > { %586 = vst [vmem:[#allocation3 + $0x38] sm:$0xff] %v3566_v21 }
  0x8d   : > { %587 = vst [vmem:[#allocation3 + $0x30] sm:$0xff] %v3566_v21 }
  0x8e   : > { %588 = vst [vmem:[#allocation3] sm:$0xff] %v3566_v21 }
  0x8f   : > { %529 = vmatpush.bf16.msra.mxu0 %v2979_v2  ;;  %v3287_v11 = vpop.eup %3286 }
  0x90   : > { %3127 = vpush %v3287_v11 }
  0x93   : > { %530 = vmatpush.bf16.msra.mxu0 %v2978_v3 }
  0x97   : > { %531 = vmatpush.bf16.msra.mxu0 %v2977_v4 }
  0x9b   : > { %532 = vmatpush.bf16.msra.mxu0 %v2976_v5 }
  0x9f   : > { %533 = vmatpush.bf16.msra.mxu0 %v2975_v6 }
  0xa3   : > { %534 = vmatpush.bf16.msra.mxu0 %v2974_v7 }
  0xa6   : > { %535 = vmatmul.bf16.vlgmr.msra.gmra.mxu0 %v2973_v8 }
  0xc1   : > { %s3128_s7 = spop %3127 }
  0xc2   : > { %v574_v32 = vstv %s3128_s7 }
 0x123   : > { %v536_v13 = vpop.f32.mrf.mxu0 }
 0x124   : > { %v537_v14 = vadd.f32 %v3285_v12, %v536_v13 }
 0x126   : > { %v541_v15 = vmul.f32 %v537_v14, %v537_v14 }
 0x128   : > { %543 = vadd.xlane.f32.xlu0 %v541_v15 }
 0x12b   : > { %v538_v16 = vpop.f32.mrf.mxu0 }
 0x12c   : > { %v539_v17 = vadd.f32 %v3285_v12, %v538_v16 }
 0x12e   : > { %v542_v18 = vmul.f32 %v539_v17, %v539_v17 }
 0x130   : > { %545 = vadd.xlane.f32.xlu0 %v542_v18 }
 0x19b   : > { %v544_v19 = vpop.xlane.xlu0 %543 }
 0x19c   : > { %v547_v20 = vmax.f32 %v544_v19, 1e-24 }
 0x19e   : > { %3288 = vrsqrt.f32 %v547_v20  ;;  %vm555_vm1 = vweird.f32 %v547_v20 }
 0x1a3   : > { %v546_v22 = vpop.xlane.xlu0 %545 }
 0x1a4   : > { %v3289_v23 = vpop.eup %3288  ;;  %v548_v24 = vmax.f32 %v546_v22, 1e-24 }
 0x1a5   : > { %v550_v25 = vmul.f32 %v3289_v23, %v547_v20  ;;  %vm556_vm0 = vweird.f32 %v3289_v23 }
 0x1a6   : > { %3290 = vrsqrt.f32 %v548_v24  ;;  %vm557_vm2 = vmor %vm555_vm1, %vm556_vm0  ;;  %vm565_vm4 = vweird.f32 %v548_v24 }
 0x1a7   : > { %v551_v26 = vmul.f32 %v3289_v23, %v550_v25 }
 0x1a9   : > { %v552_v27 = vmul.f32 0.5, %v551_v26 }
 0x1ab   : > { %v553_v28 = vsub.f32 1.5, %v552_v27 }
 0x1ac   : > { %v3291_v29 = vpop.eup %3290 }
 0x1ad   : > { %v560_v30 = vmul.f32 %v3291_v29, %v548_v24  ;;  %v554_v31 = vmul.f32 %v3289_v23, %v553_v28  ;;  %vm566_vm3 = vweird.f32 %v3291_v29 }
 0x1ae   : > { %vm567_vm5 = vmor %vm565_vm4, %vm566_vm3 }
 0x1af   : > { %v561_v33 = vmul.f32 %v3291_v29, %v560_v30  ;;  %v558_v34 = vsel %vm557_vm2, %v3289_v23, %v554_v31 }
 0x1b0   : > { %v575_v35 = vmul.f32 %v574_v32, %v558_v34 }
 0x1b1   : > { %v562_v36 = vmul.f32 0.5, %v561_v33 }
 0x1b2   : > { %v577_v37 = vmul.f32 %v575_v35, %v537_v14 }
 0x1b3   : > { %v563_v38 = vsub.f32 1.5, %v562_v36 }
 0x1b4   : > { %579 = vst [vmem:[#allocation2] sm:$0xff] %v577_v37 }
 0x1b5   : > { %v564_v39 = vmul.f32 %v3291_v29, %v563_v38 }
 0x1b7   : > { %v568_v40 = vsel %vm567_vm5, %v3291_v29, %v564_v39 }
 0x1b8   : > { %v576_v41 = vmul.f32 %v574_v32, %v568_v40 }
 0x1ba   : > { %v578_v42 = vmul.f32 %v576_v41, %v539_v17 }
 0x1bc   : > { %580 = vst [vmem:[#allocation2 + $0x8] sm:$0xff] %v578_v42 }
 0x1bd PF: > { %v2993_v43 = vld [vmem:[%s3865_s0 + $0x38] sm:$0xff]  ;;  %v2992_v47 = vld [vmem:[%s3865_s0 + $0x30] sm:$0xff]  ;;  %v2991_v51 = vld [vmem:[%s3865_s0 + $0x28] sm:$0xff]  ;;  %s4308_s1 = sld [smem:[#allocation24_spill]] }
 0x1be   : > { %v3001_v44 = vld [vmem:[%s3865_s0 + $0x78] sm:$0xff]  ;;  %871 = vmatpush.bf16.msra.mxu0 %v2993_v43  ;;  %v3000_v48 = vld [vmem:[%s3865_s0 + $0x70] sm:$0xff]  ;;  %v2999_v52 = vld [vmem:[%s3865_s0 + $0x68] sm:$0xff] }
 0x1bf   : > { %v3009_v45 = vld [vmem:[%s3865_s0 + $0xb8] sm:$0xff]  ;;  %885 = vmatpush.bf16.msra.mxu1 %v3001_v44  ;;  %v3008_v49 = vld [vmem:[%s3865_s0 + $0xb0] sm:$0xff]  ;;  %v3007_v53 = vld [vmem:[%s3865_s0 + $0xa8] sm:$0xff] }
 0x1c0   : > { %v3017_v46 = vld [vmem:[%s3865_s0 + $0xf8] sm:$0xff]  ;;  %899 = vmatpush.bf16.msra.mxu2 %v3009_v45  ;;  %v3016_v50 = vld [vmem:[%s3865_s0 + $0xf0] sm:$0xff]  ;;  %v3015_v54 = vld [vmem:[%s3865_s0 + $0xe8] sm:$0xff] }
 0x1c1   : > { %913 = vmatpush.bf16.msra.mxu3 %v3017_v46  ;;  %v2990_v55 = vld [vmem:[%s3865_s0 + $0x20] sm:$0xff]  ;;  %v2989_v59 = vld [vmem:[%s3865_s0 + $0x18] sm:$0xff]  ;;  %v2988_v63 = vld [vmem:[%s3865_s0 + $0x10] sm:$0xff] }
 0x1c2   : > { %872 = vmatpush.bf16.msra.mxu0 %v2992_v47  ;;  %v2998_v56 = vld [vmem:[%s3865_s0 + $0x60] sm:$0xff]  ;;  %v2997_v60 = vld [vmem:[%s3865_s0 + $0x58] sm:$0xff]  ;;  %v2996_v0 = vld [vmem:[%s3865_s0 + $0x50] sm:$0xff] }
 0x1c3   : > { %886 = vmatpush.bf16.msra.mxu1 %v3000_v48  ;;  %v3006_v57 = vld [vmem:[%s3865_s0 + $0xa0] sm:$0xff]  ;;  %v3005_v61 = vld [vmem:[%s3865_s0 + $0x98] sm:$0xff]  ;;  %v3004_v1 = vld [vmem:[%s3865_s0 + $0x90] sm:$0xff]  ;;  %p2964_p6 = scmp.ne.s32.totalorder %s4308_s1, 1 }
 0x1c4   : > { %900 = vmatpush.bf16.msra.mxu2 %v3008_v49  ;;  %v3014_v58 = vld [vmem:[%s3865_s0 + $0xe0] sm:$0xff]  ;;  %v3013_v62 = vld [vmem:[%s3865_s0 + $0xd8] sm:$0xff]  ;;  %v3012_v2 = vld [vmem:[%s3865_s0 + $0xd0] sm:$0xff]  ;;  %s4309_s14 = sld [smem:[#allocation40_spill]] (!%p2964_p6) }
 0x1c5   : > { %914 = vmatpush.bf16.msra.mxu3 %v3016_v50  ;;  %v2987_v3 = vld [vmem:[%s3865_s0 + $0x8] sm:$0xff]  ;;  %v2986_v7 = vld [vmem:[%s3865_s0] sm:$0xff]  ;;  %v3029_v11 = vld [vmem:[%s3865_s0 + $0x38] sm:$0xff] }
 0x1c6   : > { %873 = vmatpush.bf16.msra.mxu0 %v2991_v51  ;;  %v2995_v4 = vld [vmem:[%s3865_s0 + $0x48] sm:$0xff]  ;;  %v2994_v8 = vld [vmem:[%s3865_s0 + $0x40] sm:$0xff]  ;;  %v3037_v12 = vld [vmem:[%s3865_s0 + $0x78] sm:$0xff] }
 0x1c7   : > { %887 = vmatpush.bf16.msra.mxu1 %v2999_v52  ;;  %v3003_v5 = vld [vmem:[%s3865_s0 + $0x88] sm:$0xff]  ;;  %v3002_v9 = vld [vmem:[%s3865_s0 + $0x80] sm:$0xff]  ;;  %v2985_v14 = vld [vmem:[%s3854_s5 + $0x14] sm:$0xf0] }
 0x1c8   : > { %901 = vmatpush.bf16.msra.mxu2 %v3007_v53  ;;  %v3011_v6 = vld [vmem:[%s3865_s0 + $0xc8] sm:$0xff]  ;;  %v3010_v10 = vld [vmem:[%s3865_s0 + $0xc0] sm:$0xff]  ;;  %v2388_v16 = vld [vmem:[%s3854_s5 + $0x18] sm:$0xf0] }
 0x1c9   : > { %915 = vmatpush.bf16.msra.mxu3 %v3015_v54  ;;  %v2386_v13 = vld [vmem:[%s3854_s5 + $0x8] sm:$0xf]  ;;  %v2983_v15 = vld [vmem:[%s3854_s5 + $0xc] sm:$0xf]  ;;  %v2378_v17 = vld [vmem:[%s3854_s5] sm:$0xf] }
 0x1ca   : > { %874 = vmatpush.bf16.msra.mxu0 %v2990_v55  ;;  %v2984_v18 = vld [vmem:[%s3854_s5 + $0xc] sm:$0xf0]  ;;  %v2982_v19 = vld [vmem:[%s3854_s5 + $0x4] sm:$0xf]  ;;  %v2380_v20 = vld [vmem:[%s3854_s5 + $0x10] sm:$0xf0]  ;;  %v2387_v23 = vor.u32 %v2985_v14, %v2386_v13  ;;  %v2391_v24 = vor.u32 %v2983_v15, %v2388_v16 }
 0x1cb   : > { %888 = vmatpush.bf16.msra.mxu1 %v2998_v56  ;;  %v3045_v21 = vld [vmem:[%s3865_s0 + $0xb8] sm:$0xff]  ;;  %v2379_v25 = vor.u32 %v2984_v18, %v2378_v17  ;;  %v2383_v26 = vor.u32 %v2982_v19, %v2380_v20  ;;  %v3028_v27 = vld [vmem:[%s3865_s0 + $0x30] sm:$0xff]  ;;  %v3027_v31 = vld [vmem:[%s3865_s0 + $0x28] sm:$0xff] }
 0x1cc   : > { %902 = vmatpush.bf16.msra.mxu2 %v3006_v57  ;;  %v3053_v22 = vld [vmem:[%s3865_s0 + $0xf8] sm:$0xff]  ;;  %v3036_v28 = vld [vmem:[%s3865_s0 + $0x70] sm:$0xff]  ;;  %v3035_v32 = vld [vmem:[%s3865_s0 + $0x68] sm:$0xff] }
 0x1cd   : > { %916 = vmatpush.bf16.msra.mxu3 %v3014_v58  ;;  %v3044_v29 = vld [vmem:[%s3865_s0 + $0xb0] sm:$0xff]  ;;  %v3043_v33 = vld [vmem:[%s3865_s0 + $0xa8] sm:$0xff]  ;;  %v3026_v35 = vld [vmem:[%s3865_s0 + $0x20] sm:$0xff] }
 0x1ce   : > { %875 = vmatpush.bf16.msra.mxu0 %v2989_v59  ;;  %v3052_v30 = vld [vmem:[%s3865_s0 + $0xf0] sm:$0xff]  ;;  %v3051_v34 = vld [vmem:[%s3865_s0 + $0xe8] sm:$0xff]  ;;  %v3034_v36 = vld [vmem:[%s3865_s0 + $0x60] sm:$0xff] }
 0x1cf   : > { %889 = vmatpush.bf16.msra.mxu1 %v2997_v60  ;;  %v3042_v37 = vld [vmem:[%s3865_s0 + $0xa0] sm:$0xff]  ;;  %v3025_v39 = vld [vmem:[%s3865_s0 + $0x18] sm:$0xff]  ;;  %v3024_v43 = vld [vmem:[%s3865_s0 + $0x10] sm:$0xff] }
 0x1d0   : > { %903 = vmatpush.bf16.msra.mxu2 %v3005_v61  ;;  %v3050_v38 = vld [vmem:[%s3865_s0 + $0xe0] sm:$0xff]  ;;  %v3033_v40 = vld [vmem:[%s3865_s0 + $0x58] sm:$0xff]  ;;  %v3032_v44 = vld [vmem:[%s3865_s0 + $0x50] sm:$0xff] }
 0x1d1   : > { %917 = vmatpush.bf16.msra.mxu3 %v3013_v62  ;;  %v3041_v41 = vld [vmem:[%s3865_s0 + $0x98] sm:$0xff]  ;;  %v3040_v45 = vld [vmem:[%s3865_s0 + $0x90] sm:$0xff]  ;;  %v3023_v47 = vld [vmem:[%s3865_s0 + $0x8] sm:$0xff] }
 0x1d2   : > { %876 = vmatpush.bf16.msra.mxu0 %v2988_v63  ;;  %v3049_v42 = vld [vmem:[%s3865_s0 + $0xd8] sm:$0xff]  ;;  %v3048_v46 = vld [vmem:[%s3865_s0 + $0xd0] sm:$0xff]  ;;  %v3031_v48 = vld [vmem:[%s3865_s0 + $0x48] sm:$0xff] }
 0x1d3   : > { %890 = vmatpush.bf16.msra.mxu1 %v2996_v0  ;;  %v3039_v49 = vld [vmem:[%s3865_s0 + $0x88] sm:$0xff]  ;;  %v3022_v51 = vld [vmem:[%s3865_s0] sm:$0xff]  ;;  %v3065_v55 = vld [vmem:[%s3865_s0 + $0x38] sm:$0xff] }
 0x1d4   : > { %904 = vmatpush.bf16.msra.mxu2 %v3004_v1  ;;  %v3047_v50 = vld [vmem:[%s3865_s0 + $0xc8] sm:$0xff]  ;;  %v3030_v52 = vld [vmem:[%s3865_s0 + $0x40] sm:$0xff]  ;;  %v3073_v56 = vld [vmem:[%s3865_s0 + $0x78] sm:$0xff] }
 0x1d5   : > { %918 = vmatpush.bf16.msra.mxu3 %v3012_v2  ;;  %v3038_v53 = vld [vmem:[%s3865_s0 + $0x80] sm:$0xff]  ;;  %v2534_v57 = vld [vmem:[%s3854_s5 + $0x28] sm:$0xf]  ;;  %v3021_v58 = vld [vmem:[%s3854_s5 + $0x34] sm:$0xf0] }
 0x1d6   : > { %877 = vmatpush.bf16.msra.mxu0 %v2987_v3  ;;  %v3046_v54 = vld [vmem:[%s3865_s0 + $0xc0] sm:$0xff]  ;;  %v3019_v59 = vld [vmem:[%s3854_s5 + $0x2c] sm:$0xf]  ;;  %v2536_v60 = vld [vmem:[%s3854_s5 + $0x38] sm:$0xf0]  ;;  %v2535_v3 = vor.u32 %v3021_v58, %v2534_v57 }
 0x1d7   : > { %891 = vmatpush.bf16.msra.mxu1 %v2995_v4  ;;  %v2526_v61 = vld [vmem:[%s3854_s5 + $0x20] sm:$0xf]  ;;  %v3020_v62 = vld [vmem:[%s3854_s5 + $0x2c] sm:$0xf0]  ;;  %v3018_v63 = vld [vmem:[%s3854_s5 + $0x24] sm:$0xf]  ;;  %v2539_v4 = vor.u32 %v3019_v59, %v2536_v60 }
 0x1d8   : > { %905 = vmatpush.bf16.msra.mxu2 %v3003_v5  ;;  %v2528_v0 = vld [vmem:[%s3854_s5 + $0x30] sm:$0xf0]  ;;  %v3081_v1 = vld [vmem:[%s3865_s0 + $0xb8] sm:$0xff]  ;;  %v2527_v5 = vor.u32 %v3020_v62, %v2526_v61  ;;  %v3079_v13 = vld [vmem:[%s3865_s0 + $0xa8] sm:$0xff] }
 0x1d9   : > { %919 = vmatpush.bf16.msra.mxu3 %v3011_v6  ;;  %v3089_v2 = vld [vmem:[%s3865_s0 + $0xf8] sm:$0xff]  ;;  %v2531_v6 = vor.u32 %v3018_v63, %v2528_v0  ;;  %v3087_v14 = vld [vmem:[%s3865_s0 + $0xe8] sm:$0xff]  ;;  %v3062_v15 = vld [vmem:[%s3865_s0 + $0x20] sm:$0xff] }
 0x1da   : > { %878 = vmatpush.bf16.msra.mxu0 %v2986_v7  ;;  %v3064_v7 = vld [vmem:[%s3865_s0 + $0x30] sm:$0xff]  ;;  %v3070_v16 = vld [vmem:[%s3865_s0 + $0x60] sm:$0xff]  ;;  %v3061_v19 = vld [vmem:[%s3865_s0 + $0x18] sm:$0xff] }
 0x1db   : > { %892 = vmatpush.bf16.msra.mxu1 %v2994_v8  ;;  %v3072_v8 = vld [vmem:[%s3865_s0 + $0x70] sm:$0xff]  ;;  %v3078_v17 = vld [vmem:[%s3865_s0 + $0xa0] sm:$0xff]  ;;  %v3069_v20 = vld [vmem:[%s3865_s0 + $0x58] sm:$0xff] }
 0x1dc   : > { %906 = vmatpush.bf16.msra.mxu2 %v3002_v9  ;;  %v3080_v9 = vld [vmem:[%s3865_s0 + $0xb0] sm:$0xff]  ;;  %v3086_v18 = vld [vmem:[%s3865_s0 + $0xe0] sm:$0xff]  ;;  %v3115_v57 = vld [vmem:[%s3865_s0 + $0xa8] sm:$0xff] }
 0x1dd   : > { %920 = vmatpush.bf16.msra.mxu3 %v3010_v10  ;;  %879 = vmatmul.bf16.vlgmr.msra.gmra.mxu0 %v2379_v25  ;;  %v3088_v10 = vld [vmem:[%s3865_s0 + $0xf0] sm:$0xff]  ;;  %v3123_v58 = vld [vmem:[%s3865_s0 + $0xe8] sm:$0xff]  ;;  %v3098_v59 = vld [vmem:[%s3865_s0 + $0x20] sm:$0xff] }
 0x1de   : > { %1215 = vmatpush.bf16.msrb.mxu0 %v3029_v11  ;;  %893 = vmatmul.bf16.vlgmr.msra.gmra.mxu1 %v2383_v26  ;;  %v3063_v11 = vld [vmem:[%s3865_s0 + $0x28] sm:$0xff]  ;;  %v3076_v25 = vld [vmem:[%s3865_s0 + $0x90] sm:$0xff]  ;;  %v3106_v60 = vld [vmem:[%s3865_s0 + $0x60] sm:$0xff] }
 0x1df   : > { %1229 = vmatpush.bf16.msrb.mxu1 %v3037_v12  ;;  %907 = vmatmul.bf16.vlgmr.msra.gmra.mxu2 %v2387_v23  ;;  %v3071_v12 = vld [vmem:[%s3865_s0 + $0x68] sm:$0xff]  ;;  %v3060_v23 = vld [vmem:[%s3865_s0 + $0x10] sm:$0xff]  ;;  %v3114_v61 = vld [vmem:[%s3865_s0 + $0xa0] sm:$0xff] }
 0x1e0   : > { %1243 = vmatpush.bf16.msrb.mxu2 %v3045_v21  ;;  %921 = vmatmul.bf16.vlgmr.msra.gmra.mxu3 %v2391_v24  ;;  %v3077_v21 = vld [vmem:[%s3865_s0 + $0x98] sm:$0xff]  ;;  %v3068_v24 = vld [vmem:[%s3865_s0 + $0x50] sm:$0xff]  ;;  %v3122_v62 = vld [vmem:[%s3865_s0 + $0xe0] sm:$0xff] }
 0x1e1   : > { %1257 = vmatpush.bf16.msrb.mxu3 %v3053_v22  ;;  %v3085_v22 = vld [vmem:[%s3865_s0 + $0xd8] sm:$0xff]  ;;  %v3084_v26 = vld [vmem:[%s3865_s0 + $0xd0] sm:$0xff] }
 0x1e2   : > { %1216 = vmatpush.bf16.msrb.mxu0 %v3028_v27  ;;  %v3059_v27 = vld [vmem:[%s3865_s0 + $0x8] sm:$0xff]  ;;  %v3097_v63 = vld [vmem:[%s3865_s0 + $0x18] sm:$0xff] }
 0x1e3   : > { %1230 = vmatpush.bf16.msrb.mxu1 %v3036_v28  ;;  %v3067_v28 = vld [vmem:[%s3865_s0 + $0x48] sm:$0xff]  ;;  %v3105_v0 = vld [vmem:[%s3865_s0 + $0x58] sm:$0xff] }
 0x1e4   : > { %1244 = vmatpush.bf16.msrb.mxu2 %v3044_v29  ;;  %v3075_v29 = vld [vmem:[%s3865_s0 + $0x88] sm:$0xff] }
 0x1e5   : > { %1258 = vmatpush.bf16.msrb.mxu3 %v3052_v30  ;;  %v3083_v30 = vld [vmem:[%s3865_s0 + $0xc8] sm:$0xff] }
 0x1e6   : > { %1217 = vmatpush.bf16.msrb.mxu0 %v3027_v31  ;;  %v3058_v31 = vld [vmem:[%s3865_s0] sm:$0xff] }
 0x1e7   : > { %1231 = vmatpush.bf16.msrb.mxu1 %v3035_v32  ;;  %v3066_v32 = vld [vmem:[%s3865_s0 + $0x40] sm:$0xff] }
 0x1e8   : > { %1245 = vmatpush.bf16.msrb.mxu2 %v3043_v33  ;;  %v3074_v33 = vld [vmem:[%s3865_s0 + $0x80] sm:$0xff] }
 0x1e9   : > { %1259 = vmatpush.bf16.msrb.mxu3 %v3051_v34  ;;  %v3082_v34 = vld [vmem:[%s3865_s0 + $0xc0] sm:$0xff] }
 0x1ea   : > { %1218 = vmatpush.bf16.msrb.mxu0 %v3026_v35  ;;  %v3101_v35 = vld [vmem:[%s3865_s0 + $0x38] sm:$0xff] }
 0x1eb   : > { %1232 = vmatpush.bf16.msrb.mxu1 %v3034_v36  ;;  %v3109_v36 = vld [vmem:[%s3865_s0 + $0x78] sm:$0xff] }
 0x1ec   : > { %1246 = vmatpush.bf16.msrb.mxu2 %v3042_v37  ;;  %v2682_v37 = vld [vmem:[%s3854_s5 + $0x48] sm:$0xf] }
 0x1ed   : > { %1260 = vmatpush.bf16.msrb.mxu3 %v3050_v38  ;;  %v3057_v38 = vld [vmem:[%s3854_s5 + $0x54] sm:$0xf0] }
 0x1ee   : > { %1219 = vmatpush.bf16.msrb.mxu0 %v3025_v39  ;;  %v3055_v39 = vld [vmem:[%s3854_s5 + $0x4c] sm:$0xf] }
 0x1ef   : > { %1233 = vmatpush.bf16.msrb.mxu1 %v3033_v40  ;;  %v2684_v40 = vld [vmem:[%s3854_s5 + $0x58] sm:$0xf0] }
 0x1f0   : > { %1247 = vmatpush.bf16.msrb.mxu2 %v3041_v41  ;;  %v2674_v41 = vld [vmem:[%s3854_s5 + $0x40] sm:$0xf] }
 0x1f1   : > { %1261 = vmatpush.bf16.msrb.mxu3 %v3049_v42  ;;  %v3056_v42 = vld [vmem:[%s3854_s5 + $0x4c] sm:$0xf0] }
 0x1f2   : > { %1220 = vmatpush.bf16.msrb.mxu0 %v3024_v43  ;;  %v3054_v43 = vld [vmem:[%s3854_s5 + $0x44] sm:$0xf] }
 0x1f3   : > { %1234 = vmatpush.bf16.msrb.mxu1 %v3032_v44  ;;  %v2676_v44 = vld [vmem:[%s3854_s5 + $0x50] sm:$0xf0] }
 0x1f4   : > { %1248 = vmatpush.bf16.msrb.mxu2 %v3040_v45  ;;  %v3117_v45 = vld [vmem:[%s3865_s0 + $0xb8] sm:$0xff] }
 0x1f5   : > { %1262 = vmatpush.bf16.msrb.mxu3 %v3048_v46  ;;  %v3125_v46 = vld [vmem:[%s3865_s0 + $0xf8] sm:$0xff] }
 0x1f6   : > { %1221 = vmatpush.bf16.msrb.mxu0 %v3023_v47  ;;  %v2683_v47 = vor.u32 %v3057_v38, %v2682_v37 }
 0x1f7   : > { %1235 = vmatpush.bf16.msrb.mxu1 %v3031_v48  ;;  %v2687_v48 = vor.u32 %v3055_v39, %v2684_v40 }
 0x1f8   : > { %1249 = vmatpush.bf16.msrb.mxu2 %v3039_v49  ;;  %v2675_v49 = vor.u32 %v3056_v42, %v2674_v41  ;;  %v590_v42 = vld [vmem:[#allocation3 + $0x10] sm:$0xff] }
 0x1f9   : > { %1263 = vmatpush.bf16.msrb.mxu3 %v3047_v50  ;;  %v2679_v50 = vor.u32 %v3054_v43, %v2676_v44 }
 0x1fa   : > { %1222 = vmatpush.bf16.msrb.mxu0 %v3022_v51  ;;  %v3100_v51 = vld [vmem:[%s3865_s0 + $0x30] sm:$0xff] }
 0x1fb   : > { %1236 = vmatpush.bf16.msrb.mxu1 %v3030_v52  ;;  %v3108_v52 = vld [vmem:[%s3865_s0 + $0x70] sm:$0xff] }
 0x1fc   : > { %1250 = vmatpush.bf16.msrb.mxu2 %v3038_v53  ;;  %v3116_v53 = vld [vmem:[%s3865_s0 + $0xb0] sm:$0xff] }
 0x1fd   : > { %1264 = vmatpush.bf16.msrb.mxu3 %v3046_v54  ;;  %1223 = vmatmul.bf16.vlgmr.msrb.gmra.mxu0 %v2527_v5  ;;  %v3124_v54 = vld [vmem:[%s3865_s0 + $0xf0] sm:$0xff] }
 0x1fe   : > { %1559 = vmatpush.bf16.msra.mxu0 %v3065_v55  ;;  %1237 = vmatmul.bf16.vlgmr.msrb.gmra.mxu1 %v2531_v6  ;;  %v3099_v55 = vld [vmem:[%s3865_s0 + $0x28] sm:$0xff]  ;;  %v3112_v5 = vld [vmem:[%s3865_s0 + $0x90] sm:$0xff] }
 0x1ff   : > { %1573 = vmatpush.bf16.msra.mxu1 %v3073_v56  ;;  %1251 = vmatmul.bf16.vlgmr.msrb.gmra.mxu2 %v2535_v3  ;;  %v3107_v56 = vld [vmem:[%s3865_s0 + $0x68] sm:$0xff]  ;;  %v3096_v3 = vld [vmem:[%s3865_s0 + $0x10] sm:$0xff] }
 0x200   : > { %1587 = vmatpush.bf16.msra.mxu2 %v3081_v1  ;;  %1265 = vmatmul.bf16.vlgmr.msrb.gmra.mxu3 %v2539_v4  ;;  %v3113_v1 = vld [vmem:[%s3865_s0 + $0x98] sm:$0xff]  ;;  %v3104_v4 = vld [vmem:[%s3865_s0 + $0x50] sm:$0xff] }
 0x201   : > { %1601 = vmatpush.bf16.msra.mxu3 %v3089_v2  ;;  %v3121_v2 = vld [vmem:[%s3865_s0 + $0xd8] sm:$0xff]  ;;  %v3120_v6 = vld [vmem:[%s3865_s0 + $0xd0] sm:$0xff] }
 0x202   : > { %1560 = vmatpush.bf16.msra.mxu0 %v3064_v7  ;;  %v3095_v7 = vld [vmem:[%s3865_s0 + $0x8] sm:$0xff] }
 0x203   : > { %1574 = vmatpush.bf16.msra.mxu1 %v3072_v8  ;;  %v3103_v8 = vld [vmem:[%s3865_s0 + $0x48] sm:$0xff] }
 0x204   : > { %1588 = vmatpush.bf16.msra.mxu2 %v3080_v9  ;;  %v3111_v9 = vld [vmem:[%s3865_s0 + $0x88] sm:$0xff] }
 0x205   : > { %1602 = vmatpush.bf16.msra.mxu3 %v3088_v10  ;;  %v3119_v10 = vld [vmem:[%s3865_s0 + $0xc8] sm:$0xff] }
 0x206   : > { %1561 = vmatpush.bf16.msra.mxu0 %v3063_v11  ;;  %v3094_v11 = vld [vmem:[%s3865_s0] sm:$0xff] }
 0x207   : > { %1575 = vmatpush.bf16.msra.mxu1 %v3071_v12  ;;  %v3102_v12 = vld [vmem:[%s3865_s0 + $0x40] sm:$0xff] }
 0x208   : > { %1589 = vmatpush.bf16.msra.mxu2 %v3079_v13  ;;  %v3110_v13 = vld [vmem:[%s3865_s0 + $0x80] sm:$0xff] }
 0x209   : > { %1603 = vmatpush.bf16.msra.mxu3 %v3087_v14  ;;  %v3118_v14 = vld [vmem:[%s3865_s0 + $0xc0] sm:$0xff] }
 0x20a   : > { %1562 = vmatpush.bf16.msra.mxu0 %v3062_v15  ;;  %v2822_v15 = vld [vmem:[%s3854_s5 + $0x60] sm:$0xf] }
 0x20b   : > { %1576 = vmatpush.bf16.msra.mxu1 %v3070_v16  ;;  %v3092_v16 = vld [vmem:[%s3854_s5 + $0x6c] sm:$0xf0] }
 0x20c   : > { %1590 = vmatpush.bf16.msra.mxu2 %v3078_v17  ;;  %v3090_v17 = vld [vmem:[%s3854_s5 + $0x64] sm:$0xf] }
 0x20d   : > { %1604 = vmatpush.bf16.msra.mxu3 %v3086_v18  ;;  %v2824_v18 = vld [vmem:[%s3854_s5 + $0x70] sm:$0xf0] }
 0x20e   : > { %1563 = vmatpush.bf16.msra.mxu0 %v3061_v19  ;;  %v2830_v19 = vld [vmem:[%s3854_s5 + $0x68] sm:$0xf] }
 0x20f   : > { %1577 = vmatpush.bf16.msra.mxu1 %v3069_v20  ;;  %v3093_v20 = vld [vmem:[%s3854_s5 + $0x74] sm:$0xf0] }
 0x210   : > { %1591 = vmatpush.bf16.msra.mxu2 %v3077_v21  ;;  %v3091_v21 = vld [vmem:[%s3854_s5 + $0x6c] sm:$0xf] }
 0x211   : > { %1605 = vmatpush.bf16.msra.mxu3 %v3085_v22  ;;  %v2832_v22 = vld [vmem:[%s3854_s5 + $0x78] sm:$0xf0] }
 0x212   : > { %1564 = vmatpush.bf16.msra.mxu0 %v3060_v23  ;;  %v2823_v23 = vor.u32 %v3092_v16, %v2822_v15 }
 0x213   : > { %1578 = vmatpush.bf16.msra.mxu1 %v3068_v24  ;;  %v2827_v24 = vor.u32 %v3090_v17, %v2824_v18 }
 0x214   : > { %1592 = vmatpush.bf16.msra.mxu2 %v3076_v25  ;;  %v2831_v25 = vor.u32 %v3093_v20, %v2830_v19 }
 0x215   : > { %1606 = vmatpush.bf16.msra.mxu3 %v3084_v26  ;;  %v2835_v26 = vor.u32 %v3091_v21, %v2832_v22 }
 0x216   : > { %1565 = vmatpush.bf16.msra.mxu0 %v3059_v27 }
 0x217   : > { %1579 = vmatpush.bf16.msra.mxu1 %v3067_v28 }
 0x218   : > { %1593 = vmatpush.bf16.msra.mxu2 %v3075_v29 }
 0x219   : > { %1607 = vmatpush.bf16.msra.mxu3 %v3083_v30 }
 0x21a   : > { %1566 = vmatpush.bf16.msra.mxu0 %v3058_v31 }
 0x21b   : > { %1580 = vmatpush.bf16.msra.mxu1 %v3066_v32 }
 0x21c   : > { %1594 = vmatpush.bf16.msra.mxu2 %v3074_v33  ;;  %v589_v33 = vld [vmem:[#allocation3 + $0x28] sm:$0xff] }
 0x21d   : > { %1608 = vmatpush.bf16.msra.mxu3 %v3082_v34  ;;  %1567 = vmatmul.bf16.vlgmr.msra.gmra.mxu0 %v2675_v49 }
 0x21e   : > { %1903 = vmatpush.bf16.msrb.mxu0 %v3101_v35  ;;  %1581 = vmatmul.bf16.vlgmr.msra.gmra.mxu1 %v2679_v50 }
 0x21f   : > { %1917 = vmatpush.bf16.msrb.mxu1 %v3109_v36  ;;  %1595 = vmatmul.bf16.vlgmr.msra.gmra.mxu2 %v2683_v47 }
 0x220   : > { %1931 = vmatpush.bf16.msrb.mxu2 %v3117_v45  ;;  %1609 = vmatmul.bf16.vlgmr.msra.gmra.mxu3 %v2687_v48 }
 0x221   : > { %1945 = vmatpush.bf16.msrb.mxu3 %v3125_v46 }
 0x222   : > { %1904 = vmatpush.bf16.msrb.mxu0 %v3100_v51  ;;  %v932_v51 = vld [vmem:[#allocation3 + $0x8] sm:$0xff] }
 0x223   : > { %1918 = vmatpush.bf16.msrb.mxu1 %v3108_v52 }
 0x224   : > { %1932 = vmatpush.bf16.msrb.mxu2 %v3116_v53 }
 0x225   : > { %1946 = vmatpush.bf16.msrb.mxu3 %v3124_v54 }
 0x226   : > { %1905 = vmatpush.bf16.msrb.mxu0 %v3099_v55 }
 0x227   : > { %1919 = vmatpush.bf16.msrb.mxu1 %v3107_v56 }
 0x228   : > { %1933 = vmatpush.bf16.msrb.mxu2 %v3115_v57 }
 0x229   : > { %1947 = vmatpush.bf16.msrb.mxu3 %v3123_v58 }
 0x22a   : > { %1906 = vmatpush.bf16.msrb.mxu0 %v3098_v59 }
 0x22b   : > { %1920 = vmatpush.bf16.msrb.mxu1 %v3106_v60  ;;  %v933_v60 = vld [vmem:[#allocation3 + $0x18] sm:$0xff] }
 0x22c   : > { %1934 = vmatpush.bf16.msrb.mxu2 %v3114_v61 }
 0x22d   : > { %1948 = vmatpush.bf16.msrb.mxu3 %v3122_v62 }
 0x22e   : > { %1907 = vmatpush.bf16.msrb.mxu0 %v3097_v63 }
 0x22f   : > { %1921 = vmatpush.bf16.msrb.mxu1 %v3105_v0 }
 0x230   : > { %1935 = vmatpush.bf16.msrb.mxu2 %v3113_v1 }
 0x231   : > { %1949 = vmatpush.bf16.msrb.mxu3 %v3121_v2 }
 0x232   : > { %1908 = vmatpush.bf16.msrb.mxu0 %v3096_v3 }
 0x233   : > { %1922 = vmatpush.bf16.msrb.mxu1 %v3104_v4 }
 0x234   : > { %1936 = vmatpush.bf16.msrb.mxu2 %v3112_v5  ;;  %v1276_v5 = vld [vmem:[#allocation3 + $0x20] sm:$0xff] }
 0x235   : > { %1950 = vmatpush.bf16.msrb.mxu3 %v3120_v6 }
 0x236   : > { %1909 = vmatpush.bf16.msrb.mxu0 %v3095_v7 }
 0x237   : > { %1923 = vmatpush.bf16.msrb.mxu1 %v3103_v8 }
 0x238   : > { %1937 = vmatpush.bf16.msrb.mxu2 %v3111_v9 }
 0x239   : > { %1951 = vmatpush.bf16.msrb.mxu3 %v3119_v10 }
 0x23a   : > { %1910 = vmatpush.bf16.msrb.mxu0 %v3094_v11 }
 0x23b   : > { %1924 = vmatpush.bf16.msrb.mxu1 %v3102_v12 }
 0x23c   : > { %1938 = vmatpush.bf16.msrb.mxu2 %v3110_v13 }
 0x23d   : > { %1952 = vmatpush.bf16.msrb.mxu3 %v3118_v14  ;;  %1911 = vmatmul.bf16.vlgmr.msrb.gmra.mxu0 %v2823_v23  ;;  %v1277_v14 = vld [vmem:[#allocation3 + $0x38] sm:$0xff]  ;;  %v1620_v23 = vld [vmem:[#allocation3 + $0x30] sm:$0xff] }
 0x23e   : > { %1925 = vmatmul.bf16.vlgmr.msrb.gmra.mxu1 %v2827_v24 }
 0x23f   : > { %1939 = vmatmul.bf16.vlgmr.msrb.gmra.mxu2 %v2831_v25 }
 0x240   : > { %1953 = vmatmul.bf16.vlgmr.msrb.gmra.mxu3 %v2835_v26 }
 0x25a   : > { %v880_v27 = vpop.f32.mrf.mxu0 }
 0x25b   : > { %v894_v28 = vpop.f32.mrf.mxu1 }
 0x25c   : > { %v895_v29 = vadd.f32 %v894_v28, %v880_v27 }
 0x262   : > { %v908_v30 = vpop.f32.mrf.mxu2  ;;  %v882_v35 = vpop.f32.mrf.mxu0 }
 0x263   : > { %v922_v31 = vpop.f32.mrf.mxu3  ;;  %v909_v32 = vadd.f32 %v908_v30, %v895_v29  ;;  %v896_v36 = vpop.f32.mrf.mxu1 }
 0x264   : > { %v897_v38 = vadd.f32 %v896_v36, %v882_v35 }
 0x265   : > { %v923_v34 = vadd.f32 %v922_v31, %v909_v32  ;;  %v1621_v31 = vld [vmem:[#allocation3] sm:$0xff] }
 0x267   : > { %v927_v37 = vadd.f32 %v923_v34, %v589_v33 }
 0x269   : > { %929 = vst [vmem:[#allocation3 + $0x28] sm:$0xff] %v927_v37 }
 0x26a   : > { %v910_v39 = vpop.f32.mrf.mxu2 }
 0x26b   : > { %v924_v40 = vpop.f32.mrf.mxu3  ;;  %v911_v41 = vadd.f32 %v910_v39, %v897_v38 }
 0x26d   : > { %v925_v43 = vadd.f32 %v924_v40, %v911_v41 }
 0x26f   : > { %v928_v44 = vadd.f32 %v925_v43, %v590_v42 }
 0x271   : > { %930 = vst [vmem:[#allocation3 + $0x10] sm:$0xff] %v928_v44 }
 0x27a   : > { %v1224_v45 = vpop.f32.mrf.mxu0 }
 0x27b   : > { %v1238_v46 = vpop.f32.mrf.mxu1 }
 0x27c   : > { %v1239_v47 = vadd.f32 %v1238_v46, %v1224_v45 }
 0x282   : > { %v1252_v48 = vpop.f32.mrf.mxu2  ;;  %v1226_v53 = vpop.f32.mrf.mxu0 }
 0x283   : > { %v1266_v49 = vpop.f32.mrf.mxu3  ;;  %v1253_v50 = vadd.f32 %v1252_v48, %v1239_v47  ;;  %v1240_v54 = vpop.f32.mrf.mxu1 }
 0x284   : > { %v1241_v56 = vadd.f32 %v1240_v54, %v1226_v53 }
 0x285   : > { %v1267_v52 = vadd.f32 %v1266_v49, %v1253_v50 }
 0x287   : > { %v1271_v55 = vadd.f32 %v1267_v52, %v932_v51 }
 0x289   : > { %1273 = vst [vmem:[#allocation3 + $0x8] sm:$0xff] %v1271_v55 }
 0x28a   : > { %v1254_v57 = vpop.f32.mrf.mxu2 }
 0x28b   : > { %v1268_v58 = vpop.f32.mrf.mxu3  ;;  %v1255_v59 = vadd.f32 %v1254_v57, %v1241_v56 }
 0x28d   : > { %v1269_v61 = vadd.f32 %v1268_v58, %v1255_v59 }
 0x28f   : > { %v1272_v62 = vadd.f32 %v1269_v61, %v933_v60 }
 0x291   : > { %1274 = vst [vmem:[#allocation3 + $0x18] sm:$0xff] %v1272_v62 }
 0x29a   : > { %v1568_v63 = vpop.f32.mrf.mxu0 }
 0x29b   : > { %v1582_v0 = vpop.f32.mrf.mxu1 }
 0x29c   : > { %v1583_v1 = vadd.f32 %v1582_v0, %v1568_v63 }
 0x2a2   : > { %v1596_v2 = vpop.f32.mrf.mxu2  ;;  %v1570_v7 = vpop.f32.mrf.mxu0 }
 0x2a3   : > { %v1610_v3 = vpop.f32.mrf.mxu3  ;;  %v1597_v4 = vadd.f32 %v1596_v2, %v1583_v1  ;;  %v1584_v8 = vpop.f32.mrf.mxu1 }
 0x2a4   : > { %v1585_v10 = vadd.f32 %v1584_v8, %v1570_v7 }
 0x2a5   : > { %v1611_v6 = vadd.f32 %v1610_v3, %v1597_v4 }
 0x2a7   : > { %v1615_v9 = vadd.f32 %v1611_v6, %v1276_v5 }
 0x2a9   : > { %1617 = vst [vmem:[#allocation3 + $0x20] sm:$0xff] %v1615_v9 }
 0x2aa   : > { %v1598_v11 = vpop.f32.mrf.mxu2 }
 0x2ab   : > { %v1612_v12 = vpop.f32.mrf.mxu3  ;;  %v1599_v13 = vadd.f32 %v1598_v11, %v1585_v10 }
 0x2ad   : > { %v1613_v15 = vadd.f32 %v1612_v12, %v1599_v13 }
 0x2af   : > { %v1616_v16 = vadd.f32 %v1613_v15, %v1277_v14 }
 0x2b1   : > { %1618 = vst [vmem:[#allocation3 + $0x38] sm:$0xff] %v1616_v16 }
 0x2ba   : > { %v1912_v17 = vpop.f32.mrf.mxu0 }
 0x2bb   : > { %v1926_v18 = vpop.f32.mrf.mxu1 }
 0x2bc   : > { %v1927_v19 = vadd.f32 %v1926_v18, %v1912_v17 }
 0x2c2   : > { %v1940_v20 = vpop.f32.mrf.mxu2  ;;  %v1914_v25 = vpop.f32.mrf.mxu0 }
 0x2c3   : > { %v1954_v21 = vpop.f32.mrf.mxu3  ;;  %v1941_v22 = vadd.f32 %v1940_v20, %v1927_v19  ;;  %v1928_v26 = vpop.f32.mrf.mxu1 }
 0x2c4   : > { %v1929_v28 = vadd.f32 %v1928_v26, %v1914_v25 }
 0x2c5   : > { %v1955_v24 = vadd.f32 %v1954_v21, %v1941_v22 }
 0x2c7   : > { %v1959_v27 = vadd.f32 %v1955_v24, %v1620_v23 }
 0x2c9   : > { %1961 = vst [vmem:[#allocation3 + $0x30] sm:$0xff] %v1959_v27 }
 0x2ca   : > { %v1942_v29 = vpop.f32.mrf.mxu2 }
 0x2cb   : > { %v1943_v30 = vadd.f32 %v1942_v29, %v1929_v28  ;;  %v1956_v32 = vpop.f32.mrf.mxu3 }
 0x2cd   : > { %v1957_v33 = vadd.f32 %v1956_v32, %v1943_v30  ;;  %1966 = sbr.rel (%p2964_p6) target bundleno = 1013 (0x3f5), region = 72 }
 0x2cf   : > { %v1960_v34 = vadd.f32 %v1957_v33, %v1621_v31 }
 0x2d1   : > { %1962 = vst [vmem:[#allocation3] sm:$0xff] %v1960_v34 }
 0x2d2   : > { %v3292_v35 = vld [vmem:[%s4309_s14] ss:$0 sm:$0xff]  ;;  %v2065_v36 = vld [vmem:[#allocation3 + $0x20] sm:$0xff]  ;;  %v2020_v37 = vld [vmem:[#allocation3 + $0x8] sm:$0xff] }
 0x2d3   : > { %v1971_v38 = vld [vmem:[#allocation3 + $0x28] sm:$0xff]  ;;  %v4043_v39 = vadd.f32 %v3292_v35, %v2065_v36  ;;  %v4045_v40 = vadd.f32 %v3292_v35, %v2020_v37  ;;  %v2066_v42 = vld [vmem:[#allocation3 + $0x38] sm:$0xff]  ;;  %v1972_v47 = vld [vmem:[#allocation3 + $0x10] sm:$0xff] }
 0x2d4   : > { %v4047_v41 = vadd.f32 %v3292_v35, %v1971_v38  ;;  %v2021_v43 = vld [vmem:[#allocation3 + $0x18] sm:$0xff]  ;;  %v4055_v48 = vadd.f32 %v3292_v35, %v2066_v42  ;;  %v4059_v50 = vadd.f32 %v3292_v35, %v1972_v47  ;;  %v2110_v55 = vld [vmem:[#allocation3 + $0x30] sm:$0xff] }
 0x2d5   : > { %v2069_v44 = vmul.f32 %v4043_v39, %v4043_v39  ;;  %v2024_v45 = vmul.f32 %v4045_v40, %v4045_v40  ;;  %v4057_v49 = vadd.f32 %v3292_v35, %v2021_v43  ;;  %v4069_v57 = vadd.f32 %v3292_v35, %v2110_v55  ;;  %v4112_v43 = vld [vmem:[#allocation2] sm:$0xff] }
 0x2d6   : > { %v1979_v46 = vmul.f32 %v4047_v41, %v4047_v41  ;;  %v2070_v51 = vmul.f32 %v4055_v48, %v4055_v48  ;;  %v1980_v53 = vmul.f32 %v4059_v50, %v4059_v50 }
 0x2d7   : > { %2071 = vadd.xlane.f32.xlu2 %v2069_v44  ;;  %2026 = vadd.xlane.f32.xlu1 %v2024_v45  ;;  %v2025_v52 = vmul.f32 %v4057_v49, %v4057_v49  ;;  %v2114_v59 = vmul.f32 %v4069_v57, %v4069_v57 }
 0x2d8   : > { %1981 = vadd.xlane.f32.xlu0 %v1979_v46  ;;  %v2111_v54 = vld [vmem:[#allocation3] sm:$0xff] }
 0x2d9   : > { %v4067_v56 = vadd.f32 %v3292_v35, %v2111_v54 }
 0x2db   : > { %v2115_v58 = vmul.f32 %v4067_v56, %v4067_v56 }
 0x2df   : > { %2073 = vadd.xlane.f32.xlu2 %v2070_v51  ;;  %2028 = vadd.xlane.f32.xlu1 %v2025_v52 }
 0x2e0   : > { %1983 = vadd.xlane.f32.xlu0 %v1980_v53 }
 0x2e7   : > { %2118 = vadd.xlane.f32.xlu1 %v2115_v58 }
 0x2e8   : > { %2116 = vadd.xlane.f32.xlu0 %v2114_v59 }
 0x34a   : > { %v2072_v60 = vpop.xlane.xlu2 %2071  ;;  %v2027_v61 = vpop.xlane.xlu1 %2026 }
 0x34b   : > { %v4075_v62 = vmax.f32 %v2072_v60, 1e-24  ;;  %v2030_v63 = vmax.f32 %v2027_v61, 1e-24  ;;  %v1982_v0 = vpop.xlane.xlu0 %1981 }
 0x34c   : > { %v1985_v1 = vmax.f32 %v1982_v0, 1e-24 }
 0x34d   : > { %3293 = vrsqrt.f32 %v4075_v62  ;;  %vm2038_vm6 = vweird.f32 %v2030_v63  ;;  %vm2083_vm11 = vweird.f32 %v4075_v62 }
 0x34e   : > { %3295 = vrsqrt.f32 %v2030_v63  ;;  %vm1993_vm9 = vweird.f32 %v1985_v1 }
 0x34f   : > { %3297 = vrsqrt.f32 %v1985_v1 }
 0x352   : > { %v2074_v2 = vpop.xlane.xlu2 %2073  ;;  %v2029_v3 = vpop.xlane.xlu1 %2028 }
 0x353   : > { %v4078_v4 = vpop.eup %3293  ;;  %v2076_v5 = vmax.f32 %v2074_v2, 1e-24  ;;  %v4080_v6 = vmax.f32 %v2029_v3, 1e-24  ;;  %v1984_v7 = vpop.xlane.xlu0 %1983 }
 0x354   : > { %v3296_v8 = vpop.eup %3295  ;;  %v4082_v9 = vmax.f32 %v1984_v7, 1e-24  ;;  %v2078_v13 = vmul.f32 %v4078_v4, %v4075_v62  ;;  %vm2084_vm3 = vweird.f32 %v4078_v4  ;;  %v1968_v7 = vld [vmem:[#allocation2 + $0x8] sm:$0xff] }
 0x355   : > { %v3298_v10 = vpop.eup %3297  ;;  %v2033_v11 = vmul.f32 %v3296_v8, %v2030_v63  ;;  %3299 = vrsqrt.f32 %v2076_v5  ;;  %vm2039_vm7 = vweird.f32 %v3296_v8  ;;  %vm2093_vm13 = vweird.f32 %v2076_v5 }
 0x356   : > { %v1988_v12 = vmul.f32 %v3298_v10, %v1985_v1  ;;  %3301 = vrsqrt.f32 %v4080_v6  ;;  %v2079_v20 = vmul.f32 %v4078_v4, %v2078_v13  ;;  %vm1994_vm8 = vweird.f32 %v3298_v10  ;;  %vm4105_vm10 = vmor %vm2038_vm6, %vm2039_vm7 }
 0x357   : > { %v2034_v14 = vmul.f32 %v3296_v8, %v2033_v11  ;;  %3303 = vrsqrt.f32 %v4082_v9  ;;  %vm1995_vm12 = vmor %vm1993_vm9, %vm1994_vm8  ;;  %vm2048_vm15 = vweird.f32 %v4080_v6  ;;  %vm2003_vm5 = vweird.f32 %v4082_v9 }
 0x358   : > { %v1989_v15 = vmul.f32 %v3298_v10, %v1988_v12  ;;  %v2080_v32 = vmul.f32 0.5, %v2079_v20  ;;  %vm4151_vm7 = vmor %vm2083_vm11, %vm2084_vm3 }
 0x359   : > { %v2035_v16 = vmul.f32 0.5, %v2034_v14 }
 0x35a   : > { %v1990_v17 = vmul.f32 0.5, %v1989_v15  ;;  %v2119_v18 = vpop.xlane.xlu1 %2118  ;;  %v2081_v54 = vsub.f32 1.5, %v2080_v32 }
 0x35b   : > { %v4088_v19 = vpop.eup %3299  ;;  %v2036_v21 = vsub.f32 1.5, %v2035_v16  ;;  %v4091_v22 = vmax.f32 %v2119_v18, 1e-24  ;;  %v2117_v23 = vpop.xlane.xlu0 %2116 }
 0x35c   : > { %v4093_v24 = vpop.eup %3301  ;;  %v1991_v25 = vsub.f32 1.5, %v1990_v17  ;;  %v2088_v26 = vmul.f32 %v4088_v19, %v2076_v5  ;;  %v4096_v27 = vmax.f32 %v2117_v23, 1e-24  ;;  %vm2094_vm14 = vweird.f32 %v4088_v19 }
 0x35d   : > { %v3304_v28 = vpop.eup %3303  ;;  %v2043_v29 = vmul.f32 %v4093_v24, %v4080_v6  ;;  %3305 = vrsqrt.f32 %v4091_v22  ;;  %v2037_v35 = vmul.f32 %v3296_v8, %v2036_v21  ;;  %vm2049_vm0 = vweird.f32 %v4093_v24  ;;  %vm4123_vm1 = vmor %vm2093_vm13, %vm2094_vm14 }
 0x35e   : > { %v2089_v30 = vmul.f32 %v4088_v19, %v2088_v26  ;;  %v1998_v31 = vmul.f32 %v3304_v28, %v4082_v9  ;;  %3307 = vrsqrt.f32 %v4096_v27  ;;  %v1992_v36 = vmul.f32 %v3298_v10, %v1991_v25  ;;  %vm4133_vm4 = vmor %vm2048_vm15, %vm2049_vm0 }
 0x35f   : > { %v2044_v34 = vmul.f32 %v4093_v24, %v2043_v29  ;;  %v2041_v44 = vsel %vm4105_vm10, %v3296_v8, %v2037_v35  ;;  %vm2004_vm2 = vweird.f32 %v3304_v28  ;;  %vm2128_vm8 = vweird.f32 %v4096_v27 }
 0x360   : > { %v2090_v37 = vmul.f32 0.5, %v2089_v30  ;;  %v1999_v38 = vmul.f32 %v3304_v28, %v1998_v31  ;;  %v1996_v45 = vsel %vm1995_vm12, %v3298_v10, %v1992_v36  ;;  %v2052_v51 = vmul.f32 %v2041_v44, %v4045_v40  ;;  %vm2005_vm6 = vmor %vm2003_vm5, %vm2004_vm2 }
 0x361   : > { %v2045_v42 = vmul.f32 0.5, %v2044_v34  ;;  %v2007_v52 = vmul.f32 %v1996_v45, %v4047_v41  ;;  %v2082_v10 = vmul.f32 %v4078_v4, %v2081_v54  ;;  %vm2138_vm11 = vweird.f32 %v4091_v22 }
 0x362   : > { %v2091_v46 = vsub.f32 1.5, %v2090_v37  ;;  %v2000_v47 = vmul.f32 0.5, %v1999_v38  ;;  %v2054_v41 = vmul.f32 %v2052_v51, %v4112_v43 }
 0x363   : > { %v3306_v53 = vpop.eup %3305  ;;  %v2046_v55 = vsub.f32 1.5, %v2045_v42  ;;  %v2009_v63 = vmul.f32 %v2007_v52, %v4112_v43  ;;  %v2086_v62 = vsel %vm4151_vm7, %v4078_v4, %v2082_v10 }
 0x364   : > { %v3308_v58 = vpop.eup %3307  ;;  %v2001_v60 = vsub.f32 1.5, %v2000_v47  ;;  %v2133_v40 = vmul.f32 %v3306_v53, %v4091_v22  ;;  %v2092_v0 = vmul.f32 %v4088_v19, %v2091_v46  ;;  %2056 = vadd.xlane.f32.xlu1 %v2054_v41  ;;  %vm2139_vm12 = vweird.f32 %v3306_v53 }
 0x365   : > { %v2123_v61 = vmul.f32 %v3308_v58, %v4096_v27  ;;  %v2047_v5 = vmul.f32 %v4093_v24, %v2046_v55  ;;  %2011 = vadd.xlane.f32.xlu2 %v2009_v63  ;;  %vm2129_vm9 = vweird.f32 %v3308_v58  ;;  %vm2140_vm13 = vmor %vm2138_vm11, %vm2139_vm12 }
 0x366   : > { %v2134_v2 = vmul.f32 %v3306_v53, %v2133_v40  ;;  %v2002_v3 = vmul.f32 %v3304_v28, %v2001_v60  ;;  %v2096_v8 = vsel %vm4123_vm1, %v4088_v19, %v2092_v0  ;;  %vm2130_vm10 = vmor %vm2128_vm8, %vm2129_vm9 }
 0x367   : > { %v2124_v6 = vmul.f32 %v3308_v58, %v2123_v61  ;;  %v2098_v13 = vmul.f32 %v2096_v8, %v4055_v48  ;;  %v2051_v9 = vsel %vm4133_vm4, %v4093_v24, %v2047_v5 }
 0x368   : > { %v2135_v11 = vmul.f32 0.5, %v2134_v2  ;;  %v2006_v12 = vsel %vm2005_vm6, %v3304_v28, %v2002_v3  ;;  %v2053_v17 = vmul.f32 %v2051_v9, %v4057_v49 }
 0x369   : > { %v2125_v15 = vmul.f32 0.5, %v2124_v6  ;;  %v2008_v16 = vmul.f32 %v2006_v12, %v4059_v50  ;;  %v2100_v48 = vmul.f32 %v2098_v13, %v1968_v7  ;;  %v2097_v50 = vmul.f32 %v2086_v62, %v4043_v39 }
 0x36a   : > { %v2055_v20 = vmul.f32 %v2053_v17, %v1968_v7  ;;  %v2136_v21 = vsub.f32 1.5, %v2135_v11  ;;  %v1969_v39 = vlaneseq }
 0x36b   : > { %v2126_v18 = vsub.f32 1.5, %v2125_v15  ;;  %v2010_v19 = vmul.f32 %v2008_v16, %v1968_v7  ;;  %v2099_v26 = vmul.f32 %v2097_v50, %v4112_v43 }
 0x36c   : > { %2103 = vadd.xlane.f32.xlu1 %v2100_v48  ;;  %v2137_v25 = vmul.f32 %v3306_v53, %v2136_v21  ;;  %v1970_v31 = vand.u32 127, %v1969_v39 }
 0x36d   : > { %2013 = vadd.xlane.f32.xlu0 %v2010_v19  ;;  %v2127_v23 = vmul.f32 %v3308_v58, %v2126_v18  ;;  %2058 = vadd.xlane.f32.xlu2 %v2055_v20 }
 0x36e   : > { %v2141_v4 = vsel %vm2140_vm13, %v3306_v53, %v2137_v25  ;;  %vm2060_vm14 = vcmp.eq.s32.totalorder %v1970_v31, 1  ;;  %vm2015_vm15 = vcmp.eq.s32.totalorder %v1970_v31, 0  ;;  %vm2105_vm0 = vcmp.eq.s32.totalorder %v1970_v31, 2 }
 0x36f   : > { %v2131_v49 = vsel %vm2130_vm10, %v3308_v58, %v2127_v23  ;;  %v2143_v28 = vmul.f32 %v2141_v4, %v4067_v56  ;;  %vm2150_vm1 = vcmp.eq.s32.totalorder %v1970_v31, 3 }
 0x370   : > { %v2142_v24 = vmul.f32 %v2131_v49, %v4069_v57 }
 0x371   : > { %v2145_v29 = vmul.f32 %v2143_v28, %v1968_v7 }
 0x372   : > { %v2144_v27 = vmul.f32 %v2142_v24, %v4112_v43 }
 0x375   : > { %2101 = vadd.xlane.f32.xlu0 %v2099_v26  ;;  %2146 = vadd.xlane.f32.xlu2 %v2144_v27 }
 0x37d   : > { %2148 = vadd.xlane.f32.xlu0 %v2145_v29 }
 0x3d7   : > { %v2057_v32 = vpop.xlane.xlu1 %2056 }
 0x3d8   : > { %v2012_v30 = vpop.xlane.xlu2 %2011  ;;  %v2061_v33 = vsel %vm2060_vm14, %v2057_v32, 0.0 }
 0x3d9   : > { %v2016_v34 = vsel %vm2015_vm15, %v2012_v30, 0.0 }
 0x3da   : > { %v2063_v35 = vadd.f32 %v2061_v33, %v2016_v34 }
 0x3df   : > { %v2104_v45 = vpop.xlane.xlu1 %2103 }
 0x3e0   : > { %v2014_v22 = vpop.xlane.xlu0 %2013  ;;  %v2059_v57 = vpop.xlane.xlu2 %2058  ;;  %v2107_v51 = vsel %vm2105_vm0, %v2104_v45, 0.0 }
 0x3e1   : > { %v2017_v37 = vsel %vm2015_vm15, %v2014_v22, 0.0  ;;  %v2062_v56 = vsel %vm2060_vm14, %v2059_v57, 0.0 }
 0x3e2   : > { %v2064_v46 = vadd.f32 %v2062_v56, %v2017_v37 }
 0x3e4   : > { %v2109_v53 = vadd.f32 %v2107_v51, %v2064_v46 }
 0x3e8   : > { %v2102_v36 = vpop.xlane.xlu0 %2101  ;;  %v2147_v43 = vpop.xlane.xlu2 %2146 }
 0x3e9   : > { %v2106_v38 = vsel %vm2105_vm0, %v2102_v36, 0.0  ;;  %v2151_v44 = vsel %vm2150_vm1, %v2147_v43, 0.0 }
 0x3ea   : > { %v2108_v42 = vadd.f32 %v2106_v38, %v2063_v35 }
 0x3ec   : > { %v2153_v47 = vadd.f32 %v2151_v44, %v2108_v42 }
 0x3ee   : > { %2155 = vst [vmem:[%s3872_s2] sm:$0xff] %v2153_v47 }
 0x3f0   : > { %v2149_v52 = vpop.xlane.xlu0 %2148 }
 0x3f1   : > { %v2152_v54 = vsel %vm2150_vm1, %v2149_v52, 0.0 }
 0x3f2   : > { %v2154_v55 = vadd.f32 %v2152_v54, %v2109_v53 }
 0x3f4   : > { %2156 = vst [vmem:[%s3872_s2 + $0x8] sm:$0xff] %v2154_v55 }
 0x3f5 PF: > { %s4318_s19 = sld [smem:[#allocation25_spill]]  ;;  %s2170_s11 = sshll.u32 %s3872_s2, 4  ;;  %s2171_s11 = int_to_ptr.vmem [resolvable:$true] %s2170_s11 }
 0x3f6   : > { %s4320_s26 = sld [smem:[#allocation41_spill]]  ;;  %s2158_s17 = scalar_lea.sflag [#allocation7], %s3842_s6 }
 0x3fb   : > { %s3126_s21 = sshll.u32 %s4318_s19, 4 }
 0x3fc   : > { %s4321_s0 = smov %s4320_s26  ;;  %s2169_s27 = scalar_lea.hbm %s4320_s26, %s3126_s21 }
 0x3fd   : > { %s2172_s29 = sshll.u32 %s2169_s27, 4  ;;  %s3415_s18 = scalar_lea.hbm %s4321_s0, 32  ;;  %s2173_s29 = int_to_ptr.hbm [resolvable:$true] %s2172_s29 }
 0x3fe   : > { %s3409_s23 = sshra.s32 %s2173_s29, 4  ;;  %s3410_s23 = int_to_ptr.hbm [resolvable:$true] %s3409_s23 }
 0x3ff   : > { %s3411_s16 = scalar_lea.hbm %s3410_s23, 16  ;;  %p3416_p5 = scmp.lt.s32.totalorder %s3410_s23, %s4321_s0 }
 0x400   : > { %p3412_p8 = scmp.ne.s32.totalorder %s3410_s23, %s3411_s16  ;;  %p3417_p10 = scmp.lt.s32.totalorder %s3415_s18, %s3411_s16 }
 0x402   : > { %p3413_p9 = pnand %p3412_p8, %p3772_p7  ;;  %p3418_p4 = por %p3417_p10, %p3416_p5 }
 0x404   : > { %p3414_p2 = pneg %p3413_p9 }
 0x406   : > { %p3419_p13 = pnand %p3418_p4, %p3414_p2 }
 0x408   : > { %3422 = shalt.err (!%p3419_p13)
}
 0x409   : > { %s3567_s6 = smov 128   ;;  %s3568_s2 = smov 8  }
 0x40a   : > { %3146 = dma.vmem_to_hbm [thread:$0]  (%p3772_p7), %s2171_s11, 256, %s2173_s29, %s2158_s17, %s3567_s6, %s3567_s6, %s3568_s2  }
 0x40b PF: > { %s4322_s25 = sld [smem:[#allocation23_spill]]  ;;  %p3158_p11 = scmp.ge.s32.totalorder %s3553_s15, 2 }
 0x40d   : > { %p3153_p1 = pnand %p3158_p11, %p3779_p0 }
 0x40f   : > { %p3154_p3 = pneg %p3153_p1 }
 0x411   : > { %s2187_s14 = sand.u32 1, %s4322_s25  }
 0x412   : > { %s2188_s19 = scalar_lea.sflag [#allocation7], %s2187_s14 }
 0x413   : > { %3496 = dma.done.wait (%p3154_p3), %s2188_s19, 256  }
 0x414   : > { %3498 = vsyncadd (%p3154_p3), %s2188_s19, 4294967040  ;;  %s30_s15 = sadd.s32 1, %s3553_s15   ;;  %s4325_s26 = sld [smem:[#allocation22_spill]] }
 0x415   : > { %p4190_p12 = scmp.ge.s32.totalorder %s30_s15, 6   ;;  %s4326_s20 = sld [smem:[#allocation32_spill]] }
 0x416   : > { %s4327_s5 = sld [smem:[#allocation30_spill]]  ;;  %s4332_s27 = smov %s3509_s28 }
 0x417   : > { %s4328_s24 = sld [smem:[#allocation29_spill]]  ;;  %s4334_s29 = smov %s3517_s30 }
 0x418   : > { %s4329_s12 = sld [smem:[#allocation26_spill]]  ;;  %s4335_s30 = smov %s3521_s8 }
 0x419   : > { %s4330_s17 = sld [smem:[#allocation27_spill]]  ;;  %s4337_s6 = smov %s3529_s9 }
 0x41a   : > { %s4331_s14 = sld [smem:[#allocation28_spill]]  ;;  %s4338_s9 = smov %s3533_s10 }
 0x41b   : > { %s4333_s28 = smov %s4326_s20  ;;  %s4340_s11 = smov %s3545_s13 }
 0x41c   : > { %s4336_s8 = smov %s4327_s5  ;;  %29 = sbr.rel (!%p4190_p12) target bundleno = 22 (0x16), region = 142 }
 0x41d   : > { %s4339_s10 = smov %s4328_s24 }
 0x41f   : > { %s4341_s13 = smov %s4330_s17 }
 0x421   :  { %2194 = vsyncpa [#allocation6], 1 }
 0x422   :  { %2196 = vsyncpa [#allocation6 + $0x1], 1 }
 0x423   :  { %2197 = vsyncpa [#allocation9], 1 }
 0x424   :  { %2199 = vsyncpa [#allocation9 + $0x1], 1 }
 0x425   :  { %2200 = vsyncpa [#allocation12], 1 }
 0x426   :  { %2202 = vsyncpa [#allocation12 + $0x1], 1 }
 0x427   :  { %2203 = vsyncpa [#allocation7], 1 }
 0x428   :  { %2205 = vsyncpa [#allocation7 + $0x1], 1 }

</bundles_post_ra>
